<compile_context>
chip_gen: v6e
topology: v6e:2x2x1
jax: 0.10.0
libtpu: 0.0.40
codegen_flags: <defaults>
</compile_context>

<pallas_src>
import functools
import math

import jax
import jax.numpy as jnp
from jax import lax
from jax.experimental import pallas as pl
from jax.experimental.pallas import tpu as pltpu


def _uniform_from_counter(seed_u32, gid_u32):
    """splitmix32-style integer mixer -> uniform f32 in (0, 1)."""
    x = gid_u32 + seed_u32 * jnp.uint32(0x9E3779B9)
    x = (x ^ (x >> 16)) * jnp.uint32(0x7FEB352D)
    x = (x ^ (x >> 15)) * jnp.uint32(0x846CA68B)
    x = x ^ (x >> 16)
    bits = (x >> 8).astype(jnp.int32)            # 24 random bits, exact in f32
    return (bits.astype(jnp.float32) + 0.5) * jnp.float32(1.0 / (1 << 24))


def _gumbel_quantizer_kernel(seed_ref, x_ref, w_ref, b_ref, e_ref,
                             zq_ref, kl_ref, idx_ref,
                             *, codebook_size, hw, tile_hw):
    # x_ref : (C, T)    pixel tile, channels on sublanes (batch dim squeezed)
    # w_ref : (K, C)    1x1-conv weight, bf16 (resident)
    # b_ref : (K, 1)    conv bias, f32 (resident)
    # e_ref : (D, K)    embedding table transposed, f32 (resident)
    # zq_ref: (D, T)    quantized output (lane-dense)
    # kl_ref: (1, 128)  per-tile KL partial sum (lane-broadcast scalar)
    # idx_ref:(1, T)    argmax code indices (lane-dense)
    K = codebook_size
    T = tile_hw

    # 1x1 conv == W @ x + b -> (K, T) on the MXU; bf16 inputs, f32 accumulate.
    x_bf = x_ref[...].astype(jnp.bfloat16)
    logits = jnp.dot(w_ref[...], x_bf,
                     preferred_element_type=jnp.float32) + b_ref[...]

    # Softmax pieces (shared between the sampler and the KL term).
    m = jnp.max(logits, axis=0, keepdims=True)           # (1, T)
    centered = logits - m                                 # (K, T)
    ex = jnp.exp(centered)                                # (K, T)
    s = jnp.sum(ex, axis=0, keepdims=True)                # (1, T)

    # ---- Hard Gumbel-max sample via exponential race ------------------------
    # argmax_k (logits_k + Gumbel_k) == argmax_k ex_k / E_k with E_k = -log(U_k),
    # U_k ~ Uniform(0,1).  The hard sample is temperature-invariant, so no
    # 1/tau scale is applied here.  Noise is generated in-kernel from a
    # counter hash (no (K, N) HBM noise stream); statistically equivalent to,
    # but not bit-matching, torch's sampler.
    b_id = pl.program_id(0).astype(jnp.uint32)
    t_id = pl.program_id(1).astype(jnp.uint32)
    row_k = lax.broadcasted_iota(jnp.int32, (K, T), 0)
    col = lax.broadcasted_iota(jnp.int32, (K, T), 1)
    gid = ((b_id * jnp.uint32(hw)
            + t_id * jnp.uint32(T)
            + col.astype(jnp.uint32)) * jnp.uint32(K)
           + row_k.astype(jnp.uint32))
    u = _uniform_from_counter(seed_ref[0].astype(jnp.uint32), gid)
    e_noise = -jnp.log(u)                                 # Exp(1), strictly > 0
    race = ex / e_noise                                   # (K, T)

    iota_f = row_k.astype(jnp.float32)
    r_max = jnp.max(race, axis=0, keepdims=True)          # (1, T)
    idx_row = jnp.min(jnp.where(race == r_max, iota_f, jnp.float32(K)),
                      axis=0, keepdims=True)              # first max, (1, T)
    one_hot_t = (iota_f == idx_row).astype(jnp.float32)   # (K, T)

    # z_q^T = E^T(D,K) @ one_hot^T(K,T) -> lane-dense (D, T) store.
    zq_ref[...] = jnp.dot(e_ref[...], one_hot_t,
                          preferred_element_type=jnp.float32)

    # KL(q || uniform) per pixel via the log-sum-exp identity (no per-element
    # log, qy never materialized; the PyTorch 1e-10 eps is dropped — the
    # rewrite is more numerically stable):
    #   KL = log K - log S + (1/S) * sum_k ex_k * (logits_k - m)
    inv_s = 1.0 / s                                        # row-level divide only
    t3 = jnp.sum(ex * centered, axis=0, keepdims=True) * inv_s
    kl_row = jnp.float32(math.log(K)) - jnp.log(s) + t3    # (1, T)
    kl_sum = jnp.sum(kl_row, axis=1, keepdims=True)        # (1, 1)
    kl_ref[...] = jnp.broadcast_to(kl_sum, kl_ref.shape)

    idx_ref[...] = idx_row.astype(jnp.int32)


def _pick_tile(hw, target):
    assert hw % 128 == 0, "H*W must be a multiple of 128"
    t = min(target, hw)
    t -= t % 128
    t = max(t, 128)
    while hw % t:
        t -= 128
    # TODO(synk): use a masked tail instead of this divisor search for H*W
    #             whose factorization forces a tiny tile.
    return t


def gumbel_quantizer_forward(z, proj_w, proj_b, embed_w,
                             temperature=1.0, kl_weight=0.0005,
                             seed=0, tile_hw=2048):
    """Eval-mode (hard) GumbelQuantizer forward.

    z       : (B, C, H, W) float32, NCHW like the PyTorch module.
    proj_w  : (K, C)       Conv2d(num_hiddens, codebook_size, 1) weight, 1x1 squeezed.
    proj_b  : (K,)         Conv2d bias.
    embed_w : (K, D)       nn.Embedding weight.
    tile_hw : pixel tile per grid step (2048 default is VMEM-safe on v7x;
              v5e/v6e can use larger tiles).
    """
    del temperature  # hard forward argmax is temperature-invariant
    # TODO(synk): soft (training-mode) gumbel-softmax + straight-through bwd.
    B, C, H, W = z.shape
    K, D = embed_w.shape
    HW = H * W
    tile = _pick_tile(HW, tile_hw)
    num_tiles = HW // tile

    # NCHW is already (B, C, H*W)-contiguous -> this reshape is free (no HBM pass).
    x = z.reshape(B, C, HW).astype(jnp.float32)

    kernel = functools.partial(_gumbel_quantizer_kernel,
                               codebook_size=K, hw=HW, tile_hw=tile)

    zq, kl_part, idx = pl.pallas_call(
        kernel,
        grid=(B, num_tiles),
        in_specs=[
            pl.BlockSpec(memory_space=pltpu.MemorySpace.SMEM),         # PRNG seed
            pl.BlockSpec((None, C, tile), lambda b, i: (b, 0, i)),     # z tile
            pl.BlockSpec((K, C), lambda b, i: (0, 0)),                 # proj weight (resident)
            pl.BlockSpec((K, 1), lambda b, i: (0, 0)),                 # proj bias
            pl.BlockSpec((D, K), lambda b, i: (0, 0)),                 # embedding^T
        ],
        out_specs=[
            pl.BlockSpec((None, D, tile), lambda b, i: (b, 0, i)),     # z_q (B, D, HW)
            pl.BlockSpec((None, 1, 128), lambda b, i: (b, 0, i)),      # per-tile KL partial
            pl.BlockSpec((None, 1, tile), lambda b, i: (b, 0, i)),     # indices (lane-dense)
        ],
        out_shape=[
            jax.ShapeDtypeStruct((B, D, HW), jnp.float32),
            jax.ShapeDtypeStruct((B, 1, num_tiles * 128), jnp.float32),
            jax.ShapeDtypeStruct((B, 1, HW), jnp.int32),
        ],
        compiler_params=pltpu.CompilerParams(
            dimension_semantics=("parallel", "parallel")),
    )(jnp.asarray([seed], jnp.int32),
      x,
      proj_w.astype(jnp.bfloat16),
      proj_b.reshape(K, 1).astype(jnp.float32),
      embed_w.T.astype(jnp.float32))

    z_q = zq.reshape(B, D, H, W)                           # free reshape
    kl_per_tile = kl_part.reshape(B, num_tiles, 128)[:, :, 0]
    diff = kl_weight * (jnp.sum(kl_per_tile) / (B * HW))
    min_encoding_indices = idx.reshape(B, H, W)
    return z_q, diff, {'min_encoding_indices': min_encoding_indices}


if __name__ == "__main__":
    # small, TPU-friendly shapes consistent with the module
    B, num_hiddens, H, W = 2, 32, 16, 16
    codebook_size, emb_dim = 128, 32
    temp_init, kl_weight = 1.0, 0.0005

    key = jax.random.PRNGKey(0)
    k_z, k_w, k_b, k_e = jax.random.split(key, 4)

    z = jax.random.normal(k_z, (B, num_hiddens, H, W), dtype=jnp.float32)
    proj_w = 0.02 * jax.random.normal(k_w, (codebook_size, num_hiddens), jnp.float32)
    proj_b = 0.01 * jax.random.normal(k_b, (codebook_size,), jnp.float32)
    embed_w = jax.random.normal(k_e, (codebook_size, emb_dim), jnp.float32)

    z_q, diff, extra = gumbel_quantizer_forward(
        z, proj_w, proj_b, embed_w,
        temperature=temp_init, kl_weight=kl_weight, seed=0)
    idx = extra['min_encoding_indices']
    jax.block_until_ready((z_q, diff, idx))

    assert z_q.shape == (B, emb_dim, H, W)
    assert diff.shape == ()
    assert idx.shape == (B, H, W)
    assert int(jnp.min(idx)) >= 0 and int(jnp.max(idx)) < codebook_size

    # consistency: z_q must equal the embedding row selected by the index
    zq_gather = jnp.transpose(embed_w[idx], (0, 3, 1, 2))   # (B, D, H, W)
    assert jnp.allclose(z_q, zq_gather, atol=1e-4, rtol=1e-4)

    # the KL / diff term is noise-independent -> compare against a pure-JAX f32
    # reference (kernel uses bf16 matmul inputs + the eps-free LSE rewrite,
    # hence the slightly looser tolerance)
    logits_ref = jnp.einsum('bchw,kc->bkhw', z, proj_w) + proj_b[None, :, None, None]
    qy_ref = jax.nn.softmax(logits_ref, axis=1)
    diff_ref = kl_weight * jnp.mean(
        jnp.sum(qy_ref * jnp.log(qy_ref * codebook_size + 1e-10), axis=1))
    assert jnp.allclose(diff, diff_ref, rtol=1e-2, atol=1e-8)

    print("KERNEL_OK")
</pallas_src>

<mosaic_0001>
module attributes {stable_mosaic.version = 11 : i64} {
  func.func @_gumbel_quantizer_kernel(%arg0: i32, %arg1: i32, %arg2: memref<1xi32, #tpu.memory_space<smem>>, %arg3: memref<1x32x256xf32, #tpu.memory_space<vmem>>, %arg4: memref<128x32xbf16, #tpu.memory_space<vmem>>, %arg5: memref<128x1xf32, #tpu.memory_space<vmem>>, %arg6: memref<32x128xf32, #tpu.memory_space<vmem>>, %arg7: memref<1x32x256xf32, #tpu.memory_space<vmem>>, %arg8: memref<1x1x128xf32, #tpu.memory_space<vmem>>, %arg9: memref<1x1x256xi32, #tpu.memory_space<vmem>>) attributes {dimension_semantics = [#tpu.dimension_semantics<parallel>, #tpu.dimension_semantics<parallel>], iteration_bounds = array<i64: 2, 1>, scalar_prefetch = 0 : i64, scratch_operands = 0 : i64, tpu.core_type = #tpu.core_type<tc>, window_params = [{transform_indices = @transform_0, window_bounds = array<i64: 1>}, {transform_indices = @transform_1, window_bounds = array<i64: 1, 32, 256>}, {pipeline_mode = #tpu.pipeline_mode<synchronous>, transform_indices = @transform_2, window_bounds = array<i64: 128, 32>}, {pipeline_mode = #tpu.pipeline_mode<synchronous>, transform_indices = @transform_3, window_bounds = array<i64: 128, 1>}, {pipeline_mode = #tpu.pipeline_mode<synchronous>, transform_indices = @transform_4, window_bounds = array<i64: 32, 128>}, {transform_indices = @transform_5, window_bounds = array<i64: 1, 32, 256>}, {transform_indices = @transform_6, window_bounds = array<i64: 1, 1, 128>}, {transform_indices = @transform_7, window_bounds = array<i64: 1, 1, 256>}]} {
    %c0 = arith.constant 0 : index
    %c0_0 = arith.constant 0 : index
    %c0_1 = arith.constant 0 : index
    %0 = vector.load %arg3[%c0, %c0_0, %c0_1] : memref<1x32x256xf32, #tpu.memory_space<vmem>>, vector<1x32x256xf32>
    %1 = vector.shape_cast %0 : vector<1x32x256xf32> to vector<32x256xf32>
    %2 = arith.truncf %1 : vector<32x256xf32> to vector<32x256xbf16>
    %c0_2 = arith.constant 0 : index
    %c0_3 = arith.constant 0 : index
    %3 = vector.load %arg4[%c0_2, %c0_3] : memref<128x32xbf16, #tpu.memory_space<vmem>>, vector<128x32xbf16>
    %cst = arith.constant dense<0.000000e+00> : vector<128x256xf32>
    %4 = tpu.matmul %3, %2, %cst {dimension_numbers = #tpu.dot_dimension_numbers<[1], [0], [0], [1], [0, 0, 1, 1], [], []>} : vector<128x32xbf16>, vector<32x256xbf16>, vector<128x256xf32> -> vector<128x256xf32>
    %c0_4 = arith.constant 0 : index
    %c0_5 = arith.constant 0 : index
    %5 = vector.load %arg5[%c0_4, %c0_5] : memref<128x1xf32, #tpu.memory_space<vmem>>, vector<128x1xf32>
    %6 = vector.broadcast %5 : vector<128x1xf32> to vector<128x256xf32>
    %7 = arith.addf %4, %6 : vector<128x256xf32>
    %cst_6 = arith.constant dense<0xFF800000> : vector<256xf32>
    %8 = vector.multi_reduction <maximumf>, %7, %cst_6 [0] : vector<128x256xf32> to vector<256xf32>
    %9 = vector.shape_cast %8 : vector<256xf32> to vector<1x256xf32>
    %10 = vector.broadcast %9 : vector<1x256xf32> to vector<128x256xf32>
    %11 = arith.subf %7, %10 : vector<128x256xf32>
    %12 = math.exp %11 : vector<128x256xf32>
    %cst_7 = arith.constant dense<0.000000e+00> : vector<256xf32>
    %13 = vector.multi_reduction <add>, %12, %cst_7 [0] : vector<128x256xf32> to vector<256xf32>
    %14 = vector.shape_cast %13 : vector<256xf32> to vector<1x256xf32>
    %15 = tpu.iota {dimensions = array<i32: 0>} : vector<128x256xi32>
    %16 = tpu.iota {dimensions = array<i32: 1>} : vector<128x256xi32>
    %c256_i32 = arith.constant 256 : i32
    %17 = arith.muli %arg0, %c256_i32 : i32
    %c256_i32_8 = arith.constant 256 : i32
    %18 = arith.muli %arg1, %c256_i32_8 : i32
    %19 = arith.addi %17, %18 : i32
    %20 = vector.broadcast %19 : i32 to vector<128x256xi32>
    %21 = arith.addi %20, %16 : vector<128x256xi32>
    %c128_i32 = arith.constant 128 : i32
    %22 = vector.broadcast %c128_i32 : i32 to vector<128x256xi32>
    %23 = arith.muli %21, %22 : vector<128x256xi32>
    %24 = arith.addi %23, %15 : vector<128x256xi32>
    %c0_9 = arith.constant 0 : index
    %25 = memref.load %arg2[%c0_9] : memref<1xi32, #tpu.memory_space<smem>>
    %c-1640531527_i32 = arith.constant -1640531527 : i32
    %26 = arith.muli %25, %c-1640531527_i32 : i32
    %27 = vector.broadcast %26 : i32 to vector<128x256xi32>
    %28 = arith.addi %24, %27 : vector<128x256xi32>
    %c16_i32 = arith.constant 16 : i32
    %29 = vector.broadcast %c16_i32 : i32 to vector<128x256xi32>
    %30 = arith.shrui %28, %29 : vector<128x256xi32>
    %31 = arith.xori %28, %30 : vector<128x256xi32>
    %c2146121005_i32 = arith.constant 2146121005 : i32
    %32 = vector.broadcast %c2146121005_i32 : i32 to vector<128x256xi32>
    %33 = arith.muli %31, %32 : vector<128x256xi32>
    %c15_i32 = arith.constant 15 : i32
    %34 = vector.broadcast %c15_i32 : i32 to vector<128x256xi32>
    %35 = arith.shrui %33, %34 : vector<128x256xi32>
    %36 = arith.xori %33, %35 : vector<128x256xi32>
    %c-2073254261_i32 = arith.constant -2073254261 : i32
    %37 = vector.broadcast %c-2073254261_i32 : i32 to vector<128x256xi32>
    %38 = arith.muli %36, %37 : vector<128x256xi32>
    %c16_i32_10 = arith.constant 16 : i32
    %39 = vector.broadcast %c16_i32_10 : i32 to vector<128x256xi32>
    %40 = arith.shrui %38, %39 : vector<128x256xi32>
    %41 = arith.xori %38, %40 : vector<128x256xi32>
    %c8_i32 = arith.constant 8 : i32
    %42 = vector.broadcast %c8_i32 : i32 to vector<128x256xi32>
    %43 = arith.shrui %41, %42 : vector<128x256xi32>
    %44 = arith.sitofp %43 : vector<128x256xi32> to vector<128x256xf32>
    %cst_11 = arith.constant 5.000000e-01 : f32
    %45 = vector.broadcast %cst_11 : f32 to vector<128x256xf32>
    %46 = arith.addf %44, %45 : vector<128x256xf32>
    %cst_12 = arith.constant 5.96046448E-8 : f32
    %47 = vector.broadcast %cst_12 : f32 to vector<128x256xf32>
    %48 = arith.mulf %46, %47 : vector<128x256xf32>
    %49 = math.log %48 : vector<128x256xf32>
    %cst_13 = arith.constant 0.000000e+00 : f32
    %50 = vector.broadcast %cst_13 : f32 to vector<128x256xf32>
    %51 = arith.subf %50, %49 : vector<128x256xf32>
    %52 = arith.divf %12, %51 : vector<128x256xf32>
    %53 = arith.sitofp %15 : vector<128x256xi32> to vector<128x256xf32>
    %cst_14 = arith.constant dense<0xFF800000> : vector<256xf32>
    %54 = vector.multi_reduction <maximumf>, %52, %cst_14 [0] : vector<128x256xf32> to vector<256xf32>
    %55 = vector.shape_cast %54 : vector<256xf32> to vector<1x256xf32>
    %56 = vector.broadcast %55 : vector<1x256xf32> to vector<128x256xf32>
    %57 = arith.cmpf oeq, %52, %56 : vector<128x256xf32>
    %cst_15 = arith.constant 1.280000e+02 : f32
    %58 = vector.broadcast %cst_15 : f32 to vector<128x256xf32>
    %59 = arith.select %57, %53, %58 : vector<128x256xi1>, vector<128x256xf32>
    %cst_16 = arith.constant dense<0x7F800000> : vector<256xf32>
    %60 = vector.multi_reduction <minimumf>, %59, %cst_16 [0] : vector<128x256xf32> to vector<256xf32>
    %61 = vector.shape_cast %60 : vector<256xf32> to vector<1x256xf32>
    %62 = vector.broadcast %61 : vector<1x256xf32> to vector<128x256xf32>
    %63 = arith.cmpf oeq, %53, %62 : vector<128x256xf32>
    %64 = arith.extui %63 : vector<128x256xi1> to vector<128x256xi32>
    %65 = arith.sitofp %64 : vector<128x256xi32> to vector<128x256xf32>
    %c0_17 = arith.constant 0 : index
    %c0_18 = arith.constant 0 : index
    %66 = vector.load %arg6[%c0_17, %c0_18] : memref<32x128xf32, #tpu.memory_space<vmem>>, vector<32x128xf32>
    %cst_19 = arith.constant dense<0.000000e+00> : vector<32x256xf32>
    %67 = tpu.matmul %66, %65, %cst_19 {dimension_numbers = #tpu.dot_dimension_numbers<[1], [0], [0], [1], [0, 0, 1, 1], [], []>} : vector<32x128xf32>, vector<128x256xf32>, vector<32x256xf32> -> vector<32x256xf32>
    %c0_20 = arith.constant 0 : index
    %c0_21 = arith.constant 0 : index
    %c0_22 = arith.constant 0 : index
    %68 = vector.load %arg7[%c0_20, %c0_21, %c0_22] : memref<1x32x256xf32, #tpu.memory_space<vmem>>, vector<1x32x256xf32>
    %69 = vector.shape_cast %68 : vector<1x32x256xf32> to vector<32x256xf32>
    %70 = vector.shape_cast %67 : vector<32x256xf32> to vector<1x32x256xf32>
    tpu.vector_store %arg7[%c0_20, %c0_21, %c0_22], %70 {strides = array<i32>} : memref<1x32x256xf32, #tpu.memory_space<vmem>>, vector<1x32x256xf32>,
    %cst_23 = arith.constant 1.000000e+00 : f32
    %71 = vector.broadcast %cst_23 : f32 to vector<1x256xf32>
    %72 = arith.divf %71, %14 : vector<1x256xf32>
    %73 = arith.mulf %12, %11 : vector<128x256xf32>
    %cst_24 = arith.constant dense<0.000000e+00> : vector<256xf32>
    %74 = vector.multi_reduction <add>, %73, %cst_24 [0] : vector<128x256xf32> to vector<256xf32>
    %75 = vector.shape_cast %74 : vector<256xf32> to vector<1x256xf32>
    %76 = arith.mulf %75, %72 : vector<1x256xf32>
    %77 = math.log %14 : vector<1x256xf32>
    %cst_25 = arith.constant 4.85203028 : f32
    %78 = vector.broadcast %cst_25 : f32 to vector<1x256xf32>
    %79 = arith.subf %78, %77 : vector<1x256xf32>
    %80 = arith.addf %79, %76 : vector<1x256xf32>
    %cst_26 = arith.constant dense<0.000000e+00> : vector<1xf32>
    %81 = vector.multi_reduction <add>, %80, %cst_26 [1] : vector<1x256xf32> to vector<1xf32>
    %82 = vector.shape_cast %81 : vector<1xf32> to vector<1x1xf32>
    %83 = vector.shape_cast %82 : vector<1x1xf32> to vector<1x1xf32>
    %84 = vector.broadcast %83 : vector<1x1xf32> to vector<1x128xf32>
    %c0_27 = arith.constant 0 : index
    %c0_28 = arith.constant 0 : index
    %c0_29 = arith.constant 0 : index
    %85 = vector.load %arg8[%c0_27, %c0_28, %c0_29] : memref<1x1x128xf32, #tpu.memory_space<vmem>>, vector<1x1x128xf32>
    %86 = vector.shape_cast %85 : vector<1x1x128xf32> to vector<1x128xf32>
    %87 = vector.shape_cast %84 : vector<1x128xf32> to vector<1x1x128xf32>
    tpu.vector_store %arg8[%c0_27, %c0_28, %c0_29], %87 {strides = array<i32>} : memref<1x1x128xf32, #tpu.memory_space<vmem>>, vector<1x1x128xf32>,
    %88 = arith.fptosi %61 : vector<1x256xf32> to vector<1x256xi32>
    %c0_30 = arith.constant 0 : index
    %c0_31 = arith.constant 0 : index
    %c0_32 = arith.constant 0 : index
    %89 = vector.load %arg9[%c0_30, %c0_31, %c0_32] : memref<1x1x256xi32, #tpu.memory_space<vmem>>, vector<1x1x256xi32>
    %90 = vector.shape_cast %89 : vector<1x1x256xi32> to vector<1x256xi32>
    %91 = vector.shape_cast %88 : vector<1x256xi32> to vector<1x1x256xi32>
    tpu.vector_store %arg9[%c0_30, %c0_31, %c0_32], %91 {strides = array<i32>} : memref<1x1x256xi32, #tpu.memory_space<vmem>>, vector<1x1x256xi32>,
    return
  }
  func.func @transform_0(%arg0: i32, %arg1: i32) -> i32 {
    %c0_i32 = arith.constant 0 : i32
    %c0_i32_0 = arith.constant 0 : i32
    return %c0_i32 : i32
  }
  func.func @transform_1(%arg0: i32, %arg1: i32) -> (i32, i32, i32) {
    %c0_i32 = arith.constant 0 : i32
    %c0_i32_0 = arith.constant 0 : i32
    return %arg0, %c0_i32, %arg1 : i32, i32, i32
  }
  func.func @transform_2(%arg0: i32, %arg1: i32) -> (i32, i32) {
    %c0_i32 = arith.constant 0 : i32
    %c0_i32_0 = arith.constant 0 : i32
    %c0_i32_1 = arith.constant 0 : i32
    return %c0_i32, %c0_i32_0 : i32, i32
  }
  func.func @transform_3(%arg0: i32, %arg1: i32) -> (i32, i32) {
    %c0_i32 = arith.constant 0 : i32
    %c0_i32_0 = arith.constant 0 : i32
    %c0_i32_1 = arith.constant 0 : i32
    return %c0_i32, %c0_i32_0 : i32, i32
  }
  func.func @transform_4(%arg0: i32, %arg1: i32) -> (i32, i32) {
    %c0_i32 = arith.constant 0 : i32
    %c0_i32_0 = arith.constant 0 : i32
    %c0_i32_1 = arith.constant 0 : i32
    return %c0_i32, %c0_i32_0 : i32, i32
  }
  func.func @transform_5(%arg0: i32, %arg1: i32) -> (i32, i32, i32) {
    %c0_i32 = arith.constant 0 : i32
    %c0_i32_0 = arith.constant 0 : i32
    return %arg0, %c0_i32, %arg1 : i32, i32, i32
  }
  func.func @transform_6(%arg0: i32, %arg1: i32) -> (i32, i32, i32) {
    %c0_i32 = arith.constant 0 : i32
    %c0_i32_0 = arith.constant 0 : i32
    return %arg0, %c0_i32, %arg1 : i32, i32, i32
  }
  func.func @transform_7(%arg0: i32, %arg1: i32) -> (i32, i32, i32) {
    %c0_i32 = arith.constant 0 : i32
    %c0_i32_0 = arith.constant 0 : i32
    return %arg0, %c0_i32, %arg1 : i32, i32, i32
  }
}

</mosaic_0001>

<bundles_post_ra>
// kernel: tpu_custom_call.1
= control target key start
LH: loop header
LB: loop body
LE: loop exit
PB: predicated region body
PF: predicated region fallthrough
CT: control target
= control target key end

     0   :  { %s4898_s0 = inlined_call_operand.<no memory space> [shape: s32[1], index: 0, kind: input, shape index: {}]   ;;  %s4899_s1 = inlined_call_operand.vmem [shape: f32[2,32,256], index: 1, kind: input, shape index: {}]   ;;  %s4900_s2 = inlined_call_operand.vmem [shape: bf16[128,32], index: 2, kind: input, shape index: {}]   ;;  %s4901_s3 = inlined_call_operand.vmem [shape: f32[128,1], index: 3, kind: input, shape index: {}]   ;;  %s4902_s4 = inlined_call_operand.vmem [shape: f32[32,128], index: 4, kind: input, shape index: {}]   ;;  %s4903_s5 = inlined_call_operand.hbm [shape: f32[2,32,256], index: 5, kind: output, shape index: {0}]   ;;  %s4904_s6 = inlined_call_operand.hbm [shape: f32[2,1,128], index: 6, kind: output, shape index: {1}]   ;;  %s4905_s7 = inlined_call_operand.hbm [shape: s32[2,1,256], index: 7, kind: output, shape index: {2}]  }
   0x1   :  { %5036 = sst [smem:[#allocation61_spill]] %s4899_s1 }
   0x2   :  { %13 = sst [smem:[#allocation2]] %s4898_s0 }
   0x3   :  { %14 = vsyncpa [#allocation4], 0 }
   0x4   :  { %16 = vsyncpa [#allocation4 + $0x1], 0 }
   0x5   :  { %17 = vsyncpa [#allocation6], 0 }
   0x6   :  { %19 = vsyncpa [#allocation6 + $0x1], 0  ;;  %s2696_s26 = smov 0   ;;  %s2698_s27 = smov 0  }
   0x7   :  { %s2700_s28 = smov 0   ;;  %s2702_s29 = smov 0  }
   0x8   :  { %s2704_s30 = smov 0   ;;  %s2706_s8 = smov 0  }
   0x9 LB: > { %s2123_s0 = sadd.s32 4294967295, %s2642_s8   ;;  %s5035_s9 = sadd.s32 4294967294, %s2642_s8   ;;  %s2642_s8 = sphi %s2706_s8, %s25_s8   ;;  %s2638_s30 = sphi %s2704_s30, %s5363_s30   ;;  %s2634_s29 = sphi %s2702_s29, %s5362_s29   ;;  %s2630_s28 = sphi %s2700_s28, %s5361_s28   ;;  %s2626_s27 = sphi %s2698_s27, %s5360_s27   ;;  %s2622_s26 = sphi %s2696_s26, %s5359_s26  }
   0xa   : > { %s37_s10 = sadd.s32 1, %s2638_s30  ;;  %s158_s11 = sadd.s32 1, %s2630_s28 }
   0xb   : > { %p39_p0 = scmp.ge.s32.totalorder %s37_s10, 2  ;;  %p168_p1 = scmp.ne.s32.totalorder %s2630_s28, %s2626_s27 }
   0xc   : > { %p169_p2 = scmp.eq.s32.totalorder %s2123_s0, 1  ;;  %p174_p3 = scmp.ne.s32.totalorder %s2626_s27, %s2622_s26 }
   0xd   : > { %s5365_s10 = smov (%p39_p0, %s37_s10), 0  ;;  %p175_p5 = scmp.eq.s32.totalorder %s5035_s9, 1 }
   0xe   : > { %p2738_p4 = por %p169_p2, %p168_p1  ;;  %s153_s13 = ssub.s32 %s2638_s30, %s5365_s10 }
   0xf   : > { %p2127_p6 = scmp.ge.s32.totalorder %s2642_s8, 1  ;;  %p156_p7 = scmp.eq.s32.totalorder %s153_s13, 0 }
  0x10   : > { %p2747_p8 = por %p175_p5, %p174_p3  ;;  %p274_p9 = scmp.lt.s32.totalorder %s2642_s8, 3 }
  0x11   : > { %s2753_s15 = scalar_select %p156_p7, %s2630_s28, %s158_s11  }
  0x12   : > { %p275_p10 = pnand %p2127_p6, %p274_p9 }
  0x14   : > { %278 = sbr.rel (%p275_p10) target bundleno = 737 (0x2e1), region = 40 }
  0x19   : > { %p320_p11 = scmp.lt.s32.totalorder %s2634_s29, 1  ;;  %v2644_v0 = vmov 0   ;;  %s5039_s1 = sld [smem:[#allocation61_spill]]  ;;  %v360_v13 = vld [vmem:[%s4901_s3] sm:$0xff]  ;;  %v362_v14 = vld [vmem:[%s4901_s3 + $0x10] sm:$0xff]  ;;  %v361_v16 = vld [vmem:[%s4901_s3 + $0x8] sm:$0xff]  ;;  %v4906_v37 = vlaneseq }
  0x1a   : > { %553 = vmatprep.mubr.bf16.mxu0 %v2644_v0  ;;  %2300 = vset.pattern.permute.xlu0 %v2644_v0  ;;  %v2302_v15 = vld [vmem:[%s4900_s2] sm:$0xff]   ;;  %v363_v17 = vld [vmem:[%s4901_s3 + $0x18] sm:$0xff]  ;;  %vm496_vm0 = vcmask 261120   ;;  %v365_v18 = vld [vmem:[%s4901_s3 + $0x28] sm:$0xff]  ;;  %s2148_s21 = sshll.u32 %s2634_s29, 8  ;;  %s874_s22 = sld [smem:[#allocation2]] }
  0x1b   : > { %s321_s16 = scalar_select %p320_p11, %s2634_s29, 1  ;;  %2301 = vset.pattern.permute.xlu1 %v2644_v0  ;;  %378 = vperm.xlu0 %2300, %v360_v13   ;;  %v364_v19 = vld [vmem:[%s4901_s3 + $0x20] sm:$0xff]  ;;  %v2303_v20 = vld [vmem:[%s4900_s2 + $0x8] sm:$0xff]   ;;  %v367_v21 = vld [vmem:[%s4901_s3 + $0x38] sm:$0xff]  ;;  %v832_v38 = vand.u32 127, %v4906_v37  ;;  %v837_v40 = vstv %s2148_s21  ;;  %v2853_v41 = vshrl.u32 %v4906_v37, 7 }
  0x1c   : > { %388 = vperm.xlu1 %2301, %v362_v14   ;;  %v366_v22 = vld [vmem:[%s4901_s3 + $0x30] sm:$0xff]  ;;  %v369_v23 = vld [vmem:[%s4901_s3 + $0x48] sm:$0xff]  ;;  %v368_v24 = vld [vmem:[%s4901_s3 + $0x40] sm:$0xff]  ;;  %s4703_s24 = sand.u32 1, %s2626_s27   ;;  %s4798_s13 = sand.u32 1, %s2123_s0  }
  0x1d   : > { %s2222_s17 = sshll.u32 %s321_s16, 6  ;;  %v2304_v25 = vld [vmem:[%s4900_s2 + $0x10] sm:$0xff]   ;;  %v371_v26 = vld [vmem:[%s4901_s3 + $0x58] sm:$0xff]  ;;  %v373_v28 = vld [vmem:[%s4901_s3 + $0x68] sm:$0xff]  ;;  %v833_v39 = vadd.s32 128, %v832_v38  ;;  %5040 = vst [vmem:[#allocation10_spill] sm:$0xff] %v2853_v41  ;;  %v838_v42 = vadd.s32 %v837_v40, %v832_v38 }
  0x1e   : > { %v370_v27 = vld [vmem:[%s4901_s3 + $0x50] sm:$0xff]  ;;  %v372_v29 = vld [vmem:[%s4901_s3 + $0x60] sm:$0xff]  ;;  %v2305_v30 = vld [vmem:[%s4900_s2 + $0x18] sm:$0xff]   ;;  %v2856_v44 = vadd.s32 8, %v2853_v41  ;;  %v2859_v45 = vadd.s32 16, %v2853_v41  ;;  %v2862_v46 = vadd.s32 24, %v2853_v41 }
  0x1f   : > { %s327_s20 = scalar_lea.vmem %s5039_s1, %s2222_s17  ;;  %383 = vperm.xlu0 %2300, %v361_v16   ;;  %v375_v31 = vld [vmem:[%s4901_s3 + $0x78] sm:$0xff]  ;;  %v374_v32 = vld [vmem:[%s4901_s3 + $0x70] sm:$0xff]  ;;  %v2306_v33 = vld [vmem:[%s4900_s2 + $0x20] sm:$0xff]   ;;  %v839_v43 = vadd.s32 %v837_v40, %v833_v39  ;;  %v2865_v47 = vadd.s32 32, %v2853_v41  ;;  %v840_v48 = vmul.u32 128, %v838_v42  ;;  %v2868_v49 = vadd.s32 40, %v2853_v41 }
  0x20   : > { %v337_v1 = vld [vmem:[%s327_s20 + $0x28] sm:$0xff]  ;;  %v339_v2 = vld [vmem:[%s327_s20 + $0x38] sm:$0xff]  ;;  %v336_v3 = vld [vmem:[%s327_s20 + $0x20] sm:$0xff]  ;;  %393 = vperm.xlu1 %2301, %v363_v17   ;;  %5041 = vst [vmem:[#allocation11_spill] sm:$0xff] %v2856_v44  ;;  %s875_s23 = smul.u32 2654435769, %s874_s22 }
  0x21   : > { %v343_v4 = vpack.c.bf16 %v339_v2, %v337_v1  ;;  %v338_v5 = vld [vmem:[%s327_s20 + $0x30] sm:$0xff]  ;;  %v333_v6 = vld [vmem:[%s327_s20 + $0x8] sm:$0xff]  ;;  %v335_v7 = vld [vmem:[%s327_s20 + $0x18] sm:$0xff]  ;;  %5042 = vst [vmem:[#allocation12_spill] sm:$0xff] %v2859_v45  ;;  %v2871_v50 = vadd.s32 48, %v2853_v41  ;;  %v2874_v51 = vadd.s32 56, %v2853_v41  ;;  %v842_v61 = vadd.s32 %v840_v48, %v2853_v41 }
  0x22   : > { %v342_v8 = vpack.c.bf16 %v338_v5, %v336_v3  ;;  %v341_v9 = vpack.c.bf16 %v335_v7, %v333_v6  ;;  %v332_v10 = vld [vmem:[%s327_s20] sm:$0xff]  ;;  %v334_v11 = vld [vmem:[%s327_s20 + $0x10] sm:$0xff]  ;;  %v2307_v34 = vld [vmem:[%s4900_s2 + $0x28] sm:$0xff]   ;;  %5043 = vst [vmem:[#allocation13_spill] sm:$0xff] %v2862_v46  ;;  %v841_v52 = vmul.u32 128, %v839_v43  ;;  %v2877_v53 = vadd.s32 64, %v2853_v41 }
  0x23   : > { %533 = vmatprep.subr.bf16.mxu0 %v343_v4  ;;  %v340_v12 = vpack.c.bf16 %v334_v11, %v332_v10  ;;  %398 = vperm.xlu0 %2300, %v364_v19   ;;  %v2308_v35 = vld [vmem:[%s4900_s2 + $0x30] sm:$0xff]   ;;  %v2309_v36 = vld [vmem:[%s4900_s2 + $0x38] sm:$0xff]   ;;  %5044 = vst [vmem:[#allocation14_spill] sm:$0xff] %v2865_v47  ;;  %5045 = vst [vmem:[#allocation15_spill] sm:$0xff] %v2868_v49  ;;  %v2880_v54 = vadd.s32 72, %v2853_v41  ;;  %v2883_v55 = vadd.s32 80, %v2853_v41 }
  0x24   : > { %534 = vmatpush1.bf16.msra.mxu0 %v342_v8  ;;  %403 = vperm.xlu1 %2301, %v365_v18   ;;  %5046 = vst [vmem:[#allocation16_spill] sm:$0xff] %v2871_v50  ;;  %5047 = vst [vmem:[#allocation17_spill] sm:$0xff] %v2874_v51  ;;  %v2886_v56 = vadd.s32 88, %v2853_v41  ;;  %v2889_v57 = vadd.s32 96, %v2853_v41  ;;  %v2892_v58 = vadd.s32 104, %v2853_v41  ;;  %v2895_v59 = vadd.s32 112, %v2853_v41 }
  0x25   : > { %535 = vmatprep.subr.bf16.mxu0 %v341_v9  ;;  %5048 = vst [vmem:[#allocation18_spill] sm:$0xff] %v2877_v53  ;;  %5049 = vst [vmem:[#allocation19_spill] sm:$0xff] %v2880_v54  ;;  %v2898_v60 = vadd.s32 120, %v2853_v41  ;;  %v844_v62 = vadd.s32 %v840_v48, %v2856_v44  ;;  %v846_v63 = vadd.s32 %v840_v48, %v2859_v45  ;;  %s2129_s25 = sshll.u32 %s4703_s24, 1  ;;  %s2217_s16 = sshll.u32 %s2634_s29, 4 }
  0x26   : > { %5050 = vst [vmem:[#allocation20_spill] sm:$0xff] %v2883_v55  ;;  %5051 = vst [vmem:[#allocation21_spill] sm:$0xff] %v2886_v56  ;;  %v843_v1 = vadd.s32 %v841_v52, %v2853_v41  ;;  %v845_v2 = vadd.s32 %v841_v52, %v2856_v44  ;;  %v847_v3 = vadd.s32 %v841_v52, %v2859_v45  ;;  %s4735_s11 = scalar_lea.vmem [#allocation7], %s2129_s25  ;;  %s1968_s19 = scalar_lea.hbm %s4904_s6, %s2217_s16 }
  0x27   : > { %408 = vperm.xlu0 %2300, %v366_v22   ;;  %5052 = vst [vmem:[#allocation22_spill] sm:$0xff] %v2889_v57  ;;  %5053 = vst [vmem:[#allocation23_spill] sm:$0xff] %v2892_v58  ;;  %v848_v4 = vadd.s32 %v840_v48, %v2862_v46  ;;  %v849_v5 = vadd.s32 %v841_v52, %v2862_v46  ;;  %v850_v6 = vadd.s32 %v840_v48, %v2865_v47  ;;  %s2648_s22 = smov [#allocation5]  }
  0x28   : > { %536 = vmatpush1.bf16.msra.mxu0 %v340_v12  ;;  %413 = vperm.xlu1 %2301, %v367_v21   ;;  %5054 = vst [vmem:[#allocation24_spill] sm:$0xff] %v2895_v59  ;;  %5055 = vst [vmem:[#allocation25_spill] sm:$0xff] %v2898_v60  ;;  %v851_v7 = vadd.s32 %v841_v52, %v2865_v47  ;;  %v852_v8 = vadd.s32 %v840_v48, %v2868_v49 }
  0x29   : > { %v853_v9 = vadd.s32 %v841_v52, %v2868_v49  ;;  %v854_v10 = vadd.s32 %v840_v48, %v2871_v50  ;;  %v855_v11 = vadd.s32 %v841_v52, %v2871_v50  ;;  %v856_v12 = vadd.s32 %v840_v48, %v2874_v51 }
  0x2a   : > { %v857_v13 = vadd.s32 %v841_v52, %v2874_v51  ;;  %v858_v14 = vadd.s32 %v840_v48, %v2877_v53  ;;  %v860_v16 = vadd.s32 %v840_v48, %v2880_v54  ;;  %v861_v17 = vadd.s32 %v841_v52, %v2880_v54 }
  0x2b   : > { %2140 = vmatmul.mubr.msk.bf16.vlgmr.msra.gmra.mxu0 %vm496_vm0, %v2302_v15  ;;  %418 = vperm.xlu0 %2300, %v368_v24   ;;  %v859_v15 = vadd.s32 %v841_v52, %v2877_v53  ;;  %v862_v18 = vadd.s32 %v840_v48, %v2883_v55  ;;  %v863_v19 = vadd.s32 %v841_v52, %v2883_v55 }
  0x2c   : > { %563 = vmatprep.mubr.bf16.mxu0 %v2644_v0  ;;  %423 = vperm.xlu1 %2301, %v369_v23   ;;  %v865_v21 = vadd.s32 %v841_v52, %v2886_v56  ;;  %v866_v22 = vadd.s32 %v840_v48, %v2889_v57  ;;  %v867_v23 = vadd.s32 %v841_v52, %v2889_v57 }
  0x2d   : > { %v868_v24 = vadd.s32 %v840_v48, %v2892_v58 }
  0x2f   : > { %428 = vperm.xlu0 %2300, %v370_v27   ;;  %v871_v27 = vadd.s32 %v841_v52, %v2895_v59 }
  0x30   : > { %433 = vperm.xlu1 %2301, %v371_v26   ;;  %v870_v26 = vadd.s32 %v840_v48, %v2895_v59 }
  0x33   : > { %2141 = vmatmul.mubr.msk.bf16.gmra.mxu0 %vm496_vm0, %v2303_v20  ;;  %438 = vperm.xlu0 %2300, %v372_v29   ;;  %v864_v20 = vadd.s32 %v840_v48, %v2886_v56  ;;  %v873_v29 = vadd.s32 %v841_v52, %v2898_v60 }
  0x34   : > { %573 = vmatprep.mubr.bf16.mxu0 %v2644_v0  ;;  %443 = vperm.xlu1 %2301, %v373_v28   ;;  %v872_v28 = vadd.s32 %v840_v48, %v2898_v60 }
  0x37   : > { %448 = vperm.xlu0 %2300, %v374_v32  }
  0x38   : > { %453 = vperm.xlu1 %2301, %v375_v31  }
  0x3b   : > { %2142 = vmatmul.mubr.msk.bf16.gmra.mxu0 %vm496_vm0, %v2304_v25  ;;  %v869_v25 = vadd.s32 %v841_v52, %v2892_v58 }
  0x3c   : > { %583 = vmatprep.mubr.bf16.mxu0 %v2644_v0 }
  0x43   : > { %2143 = vmatmul.mubr.msk.bf16.gmra.mxu0 %vm496_vm0, %v2305_v30 }
  0x44   : > { %593 = vmatprep.mubr.bf16.mxu0 %v2644_v0 }
  0x4b   : > { %2144 = vmatmul.mubr.msk.bf16.gmra.mxu0 %vm496_vm0, %v2306_v33 }
  0x4c   : > { %603 = vmatprep.mubr.bf16.mxu0 %v2644_v0 }
  0x53   : > { %2145 = vmatmul.mubr.msk.bf16.gmra.mxu0 %vm496_vm0, %v2307_v34 }
  0x54   : > { %613 = vmatprep.mubr.bf16.mxu0 %v2644_v0 }
  0x5b   : > { %2146 = vmatmul.mubr.msk.bf16.gmra.mxu0 %vm496_vm0, %v2308_v35 }
  0x5c   : > { %623 = vmatprep.mubr.bf16.mxu0 %v2644_v0  ;;  %v876_v0 = vstv %s875_s23  ;;  %s311_s23 = scalar_lea.vmem [#allocation5], %s4703_s24 }
  0x5d   : > { %v2932_v30 = vadd.s32 %v876_v0, %v842_v61  ;;  %v2934_v31 = vadd.s32 %v876_v0, %v843_v1  ;;  %v2936_v32 = vadd.s32 %v876_v0, %v844_v62  ;;  %v2938_v33 = vadd.s32 %v876_v0, %v845_v2  ;;  %s1970_s25 = sshll.u32 %s311_s23, 4  ;;  %s4794_s25 = int_to_ptr.vmem [resolvable:$true] %s1970_s25 }
  0x5e   : > { %v2940_v34 = vadd.s32 %v876_v0, %v846_v63  ;;  %v2942_v35 = vadd.s32 %v876_v0, %v847_v3  ;;  %v2946_v38 = vadd.s32 %v876_v0, %v849_v5  ;;  %v2948_v39 = vadd.s32 %v876_v0, %v850_v6  ;;  %s2510_s21 = scalar_lea.vmem %s4794_s25, 16 }
  0x5f   : > { %v2950_v40 = vadd.s32 %v876_v0, %v851_v7  ;;  %v2952_v42 = vadd.s32 %v876_v0, %v852_v8  ;;  %v2954_v43 = vadd.s32 %v876_v0, %v853_v9  ;;  %v2956_v48 = vadd.s32 %v876_v0, %v854_v10  ;;  %p2511_p12 = scmp.ne.s32.totalorder %s4794_s25, %s2510_s21 }
  0x60   : > { %v2958_v52 = vadd.s32 %v876_v0, %v855_v11  ;;  %v2960_v61 = vadd.s32 %v876_v0, %v856_v12  ;;  %v2962_v62 = vadd.s32 %v876_v0, %v857_v13  ;;  %v2964_v63 = vadd.s32 %v876_v0, %v858_v14 }
  0x61   : > { %v2966_v1 = vadd.s32 %v876_v0, %v859_v15  ;;  %v2968_v2 = vadd.s32 %v876_v0, %v860_v16  ;;  %v2970_v3 = vadd.s32 %v876_v0, %v861_v17  ;;  %v2974_v5 = vadd.s32 %v876_v0, %v863_v19  ;;  %p2512_p13 = pnand %p2511_p12, %p2738_p4 }
  0x62   : > { %v2976_v6 = vadd.s32 %v876_v0, %v864_v20  ;;  %v2978_v7 = vadd.s32 %v876_v0, %v865_v21  ;;  %v2980_v8 = vadd.s32 %v876_v0, %v866_v22  ;;  %v2982_v9 = vadd.s32 %v876_v0, %v867_v23 }
  0x63   : > { %2147 = vmatmul.mubr.msk.bf16.gmra.mxu0 %vm496_vm0, %v2309_v36  ;;  %v2944_v36 = vadd.s32 %v876_v0, %v848_v4  ;;  %v2972_v4 = vadd.s32 %v876_v0, %v862_v18  ;;  %v2984_v10 = vadd.s32 %v876_v0, %v868_v24  ;;  %v2986_v11 = vadd.s32 %v876_v0, %v869_v25  ;;  %p2513_p0 = pneg %p2512_p13 }
  0x64   : > { %5056 = vst [vmem:[#allocation26_spill] sm:$0xff] %v2976_v6  ;;  %5057 = vst [vmem:[#allocation27_spill] sm:$0xff] %v2978_v7  ;;  %v2988_v12 = vadd.s32 %v876_v0, %v870_v26  ;;  %v2990_v13 = vadd.s32 %v876_v0, %v871_v27  ;;  %v2992_v14 = vadd.s32 %v876_v0, %v872_v28  ;;  %v909_v16 = vshrl.u32 %v2932_v30, 16 }
  0x65   : > { %5058 = vst [vmem:[#allocation28_spill] sm:$0xff] %v2982_v9  ;;  %5059 = vst [vmem:[#allocation29_spill] sm:$0xff] %v2984_v10  ;;  %v2994_v15 = vadd.s32 %v876_v0, %v873_v29  ;;  %v910_v17 = vshrl.u32 %v2934_v31, 16  ;;  %v911_v18 = vshrl.u32 %v2936_v32, 16  ;;  %v912_v19 = vshrl.u32 %v2938_v33, 16 }
  0x66   : > { %5060 = vst [vmem:[#allocation30_spill] sm:$0xff] %v2988_v12  ;;  %5061 = vst [vmem:[#allocation31_spill] sm:$0xff] %v2990_v13  ;;  %v913_v20 = vshrl.u32 %v2940_v34, 16  ;;  %v914_v21 = vshrl.u32 %v2942_v35, 16  ;;  %v915_v22 = vshrl.u32 %v2944_v36, 16  ;;  %v916_v23 = vshrl.u32 %v2946_v38, 16 }
  0x67   : > { %5062 = vst [vmem:[#allocation32_spill] sm:$0xff] %v2994_v15  ;;  %v917_v24 = vshrl.u32 %v2948_v39, 16  ;;  %v918_v0 = vshrl.u32 %v2950_v40, 16  ;;  %v919_v25 = vshrl.u32 %v2952_v42, 16  ;;  %v920_v26 = vshrl.u32 %v2954_v43, 16 }
  0x68   : > { %v921_v27 = vshrl.u32 %v2956_v48, 16  ;;  %v922_v28 = vshrl.u32 %v2958_v52, 16  ;;  %v923_v29 = vshrl.u32 %v2960_v61, 16  ;;  %v924_v37 = vshrl.u32 %v2962_v62, 16 }
  0x69   : > { %v925_v60 = vshrl.u32 %v2964_v63, 16  ;;  %v926_v59 = vshrl.u32 %v2966_v1, 16  ;;  %v927_v58 = vshrl.u32 %v2968_v2, 16  ;;  %v928_v57 = vshrl.u32 %v2970_v3, 16 }
  0x6a   : > { %v929_v56 = vshrl.u32 %v2972_v4, 16  ;;  %v930_v55 = vshrl.u32 %v2974_v5, 16  ;;  %v931_v54 = vshrl.u32 %v2976_v6, 16  ;;  %v932_v53 = vshrl.u32 %v2978_v7, 16 }
  0x6b   : > { %v933_v51 = vshrl.u32 %v2980_v8, 16  ;;  %v934_v50 = vshrl.u32 %v2982_v9, 16  ;;  %v935_v49 = vshrl.u32 %v2984_v10, 16  ;;  %v936_v47 = vshrl.u32 %v2986_v11, 16 }
  0x6c   : > { %v937_v46 = vshrl.u32 %v2988_v12, 16  ;;  %v938_v45 = vshrl.u32 %v2990_v13, 16  ;;  %v939_v44 = vshrl.u32 %v2992_v14, 16  ;;  %v940_v41 = vshrl.u32 %v2994_v15, 16 }
  0x6d   : > { %v3029_v6 = vxor.u32 %v909_v16, %v2932_v30  ;;  %v3032_v7 = vxor.u32 %v910_v17, %v2934_v31  ;;  %v3035_v9 = vxor.u32 %v911_v18, %v2936_v32  ;;  %v3038_v10 = vxor.u32 %v912_v19, %v2938_v33  ;;  %v5079_v18 = vld [vmem:[#allocation30_spill] sm:$0xff] }
  0x6e   : > { %v3041_v12 = vxor.u32 %v913_v20, %v2940_v34  ;;  %v3044_v13 = vxor.u32 %v914_v21, %v2942_v35  ;;  %v3047_v15 = vxor.u32 %v915_v22, %v2944_v36  ;;  %v3050_v30 = vxor.u32 %v916_v23, %v2946_v38  ;;  %v5080_v20 = vld [vmem:[#allocation31_spill] sm:$0xff]  ;;  %v5081_v23 = vld [vmem:[#allocation32_spill] sm:$0xff] }
  0x6f   : > { %v3053_v31 = vxor.u32 %v917_v24, %v2948_v39  ;;  %v3056_v32 = vxor.u32 %v918_v0, %v2950_v40  ;;  %v3059_v33 = vxor.u32 %v919_v25, %v2952_v42  ;;  %v3062_v34 = vxor.u32 %v920_v26, %v2954_v43 }
  0x70   : > { %v3065_v35 = vxor.u32 %v921_v27, %v2956_v48  ;;  %v3068_v36 = vxor.u32 %v922_v28, %v2958_v52  ;;  %v3071_v38 = vxor.u32 %v923_v29, %v2960_v61  ;;  %v3074_v39 = vxor.u32 %v924_v37, %v2962_v62 }
  0x71   : > { %5063 = vst [vmem:[#allocation33_spill] sm:$0xff] %v3059_v33  ;;  %5064 = vst [vmem:[#allocation34_spill] sm:$0xff] %v3062_v34  ;;  %v3077_v40 = vxor.u32 %v925_v60, %v2964_v63  ;;  %v3080_v42 = vxor.u32 %v926_v59, %v2966_v1  ;;  %v3083_v43 = vxor.u32 %v927_v58, %v2968_v2  ;;  %v4947_v61 = vmul.u32 2146121005, %v3029_v6  ;;  %v5075_v60 = vld [vmem:[#allocation26_spill] sm:$0xff]  ;;  %v5076_v1 = vld [vmem:[#allocation27_spill] sm:$0xff] }
  0x72   : > { %5065 = vst [vmem:[#allocation35_spill] sm:$0xff] %v3065_v35  ;;  %5066 = vst [vmem:[#allocation36_spill] sm:$0xff] %v3068_v36  ;;  %v3086_v48 = vxor.u32 %v928_v57, %v2970_v3  ;;  %v3089_v52 = vxor.u32 %v929_v56, %v2972_v4  ;;  %v4942_v37 = vmul.u32 2146121005, %v3032_v7  ;;  %v3094_v62 = vxor.u32 %v930_v55, %v2974_v5  ;;  %v5077_v4 = vld [vmem:[#allocation28_spill] sm:$0xff]  ;;  %v5078_v5 = vld [vmem:[#allocation29_spill] sm:$0xff] }
  0x73   : > { %5067 = vst [vmem:[#allocation37_spill] sm:$0xff] %v3071_v38  ;;  %5068 = vst [vmem:[#allocation38_spill] sm:$0xff] %v3074_v39  ;;  %v3097_v63 = vxor.u32 %v931_v54, %v5075_v60  ;;  %v4935_v59 = vmul.u32 2146121005, %v3035_v9  ;;  %v4934_v58 = vmul.u32 2146121005, %v3038_v10  ;;  %v3102_v57 = vxor.u32 %v932_v53, %v5076_v1 }
  0x74   : > { %5069 = vst [vmem:[#allocation39_spill] sm:$0xff] %v3077_v40  ;;  %5070 = vst [vmem:[#allocation40_spill] sm:$0xff] %v3080_v42  ;;  %v3105_v56 = vxor.u32 %v933_v51, %v2980_v8  ;;  %v4931_v2 = vmul.u32 2146121005, %v3041_v12  ;;  %v4932_v3 = vmul.u32 2146121005, %v3044_v13  ;;  %v3110_v55 = vxor.u32 %v934_v50, %v5077_v4 }
  0x75   : > { %5071 = vst [vmem:[#allocation41_spill] sm:$0xff] %v3083_v43  ;;  %5072 = vst [vmem:[#allocation42_spill] sm:$0xff] %v3086_v48  ;;  %v3113_v54 = vxor.u32 %v935_v49, %v5078_v5  ;;  %v4933_v16 = vmul.u32 2146121005, %v3047_v15  ;;  %v4936_v17 = vmul.u32 2146121005, %v3050_v30  ;;  %v3118_v53 = vxor.u32 %v936_v47, %v2986_v11 }
  0x76   : > { %5073 = vst [vmem:[#allocation43_spill] sm:$0xff] %v3089_v52  ;;  %5074 = vst [vmem:[#allocation44_spill] sm:$0xff] %v3094_v62  ;;  %v3121_v51 = vxor.u32 %v937_v46, %v5079_v18  ;;  %v4937_v8 = vmul.u32 2146121005, %v3053_v31  ;;  %v4938_v19 = vmul.u32 2146121005, %v3056_v32  ;;  %v3126_v50 = vxor.u32 %v938_v45, %v5080_v20 }
  0x77   : > { %v3129_v49 = vxor.u32 %v939_v44, %v2992_v14  ;;  %v4939_v21 = vmul.u32 2146121005, %v3059_v33  ;;  %v4940_v22 = vmul.u32 2146121005, %v3062_v34  ;;  %v3134_v47 = vxor.u32 %v940_v41, %v5081_v23 }
  0x78   : > { %v4941_v46 = vmul.u32 2146121005, %v3065_v35  ;;  %v4943_v11 = vmul.u32 2146121005, %v3068_v36  ;;  %v1005_v24 = vshrl.u32 %v4947_v61, 15  ;;  %v1006_v44 = vshrl.u32 %v4942_v37, 15 }
  0x79   : > { %v4944_v45 = vmul.u32 2146121005, %v3071_v38  ;;  %v4946_v0 = vmul.u32 2146121005, %v3074_v39  ;;  %v1007_v14 = vshrl.u32 %v4935_v59, 15  ;;  %v1008_v26 = vshrl.u32 %v4934_v58, 15 }
  0x7a   : > { %v4945_v41 = vmul.u32 2146121005, %v3077_v40  ;;  %v4951_v25 = vmul.u32 2146121005, %v3080_v42  ;;  %v1009_v27 = vshrl.u32 %v4931_v2, 15  ;;  %v1010_v60 = vshrl.u32 %v4932_v3, 15 }
  0x7b   : > { %v4953_v28 = vmul.u32 2146121005, %v3083_v43  ;;  %v4955_v29 = vmul.u32 2146121005, %v3086_v48  ;;  %v1011_v1 = vshrl.u32 %v4933_v16, 15  ;;  %v1012_v18 = vshrl.u32 %v4936_v17, 15 }
  0x7c   : > { %v4958_v4 = vmul.u32 2146121005, %v3089_v52  ;;  %v4960_v5 = vmul.u32 2146121005, %v3094_v62  ;;  %v1013_v20 = vshrl.u32 %v4937_v8, 15  ;;  %v1014_v3 = vshrl.u32 %v4938_v19, 15 }
  0x7d   : > { %v995_v23 = vmul.u32 2146121005, %v3097_v63  ;;  %v996_v2 = vmul.u32 2146121005, %v3102_v57  ;;  %v1015_v16 = vshrl.u32 %v4939_v21, 15  ;;  %v1016_v17 = vshrl.u32 %v4940_v22, 15 }
  0x7e   : > { %v997_v58 = vmul.u32 2146121005, %v3105_v56  ;;  %v998_v59 = vmul.u32 2146121005, %v3110_v55  ;;  %v1017_v8 = vshrl.u32 %v4941_v46, 15  ;;  %v1018_v19 = vshrl.u32 %v4943_v11, 15 }
  0x7f   : > { %v999_v63 = vmul.u32 2146121005, %v3113_v54  ;;  %v1000_v57 = vmul.u32 2146121005, %v3118_v53  ;;  %v1019_v21 = vshrl.u32 %v4944_v45, 15  ;;  %v1020_v22 = vshrl.u32 %v4946_v0, 15 }
  0x80   : > { %v1001_v56 = vmul.u32 2146121005, %v3121_v51  ;;  %v1002_v55 = vmul.u32 2146121005, %v3126_v50  ;;  %v1021_v46 = vshrl.u32 %v4945_v41, 15  ;;  %v1022_v11 = vshrl.u32 %v4951_v25, 15 }
  0x81   : > { %v1003_v54 = vmul.u32 2146121005, %v3129_v49  ;;  %v1004_v53 = vmul.u32 2146121005, %v3134_v47  ;;  %v1023_v45 = vshrl.u32 %v4953_v28, 15  ;;  %v1024_v51 = vshrl.u32 %v4955_v29, 15 }
  0x82   : > { %v1025_v50 = vshrl.u32 %v4958_v4, 15  ;;  %v1026_v41 = vshrl.u32 %v4960_v5, 15  ;;  %v1027_v0 = vshrl.u32 %v995_v23, 15  ;;  %v1028_v49 = vshrl.u32 %v996_v2, 15 }
  0x83   : > { %v1029_v40 = vshrl.u32 %v997_v58, 15  ;;  %v1030_v47 = vshrl.u32 %v998_v59, 15  ;;  %v1031_v39 = vshrl.u32 %v999_v63, 15  ;;  %v1032_v42 = vshrl.u32 %v1000_v57, 15 }
  0x84   : > { %v1033_v25 = vshrl.u32 %v1001_v56, 15  ;;  %v1034_v38 = vshrl.u32 %v1002_v55, 15  ;;  %v5082_v28 = vmul.u32 2146121005, %v3029_v6  ;;  %v1035_v48 = vshrl.u32 %v1003_v54, 15 }
  0x85   : > { %v1036_v52 = vshrl.u32 %v1004_v53, 15  ;;  %v5083_v4 = vmul.u32 2146121005, %v3032_v7  ;;  %v5084_v5 = vmul.u32 2146121005, %v3035_v9 }
  0x86   : > { %v3202_v43 = vxor.u32 %v1005_v24, %v5082_v28  ;;  %v5085_v35 = vmul.u32 2146121005, %v3038_v10  ;;  %v5086_v33 = vmul.u32 2146121005, %v3041_v12 }
  0x87   : > { %v3206_v62 = vxor.u32 %v1006_v44, %v5083_v4  ;;  %v3210_v36 = vxor.u32 %v1007_v14, %v5084_v5  ;;  %v5087_v24 = vmul.u32 2146121005, %v3044_v13  ;;  %v5088_v7 = vmul.u32 2146121005, %v3047_v15  ;;  %v5092_v13 = vld [vmem:[#allocation33_spill] sm:$0xff] }
  0x88   : > { %v3214_v34 = vxor.u32 %v1008_v26, %v5085_v35  ;;  %v3218_v6 = vxor.u32 %v1009_v27, %v5086_v33  ;;  %v5089_v9 = vmul.u32 2146121005, %v3050_v30  ;;  %v5090_v10 = vmul.u32 2146121005, %v3053_v31  ;;  %v5097_v30 = vld [vmem:[#allocation35_spill] sm:$0xff]  ;;  %v5100_v31 = vld [vmem:[#allocation36_spill] sm:$0xff] }
  0x89   : > { %v3222_v28 = vxor.u32 %v1010_v60, %v5087_v24  ;;  %v3226_v44 = vxor.u32 %v1011_v1, %v5088_v7  ;;  %v5091_v12 = vmul.u32 2146121005, %v3056_v32  ;;  %v5093_v26 = vmul.u32 2146121005, %v5092_v13  ;;  %v5095_v60 = vld [vmem:[#allocation34_spill] sm:$0xff]  ;;  %v5103_v32 = vld [vmem:[#allocation37_spill] sm:$0xff] }
  0x8a   : > { %v3230_v14 = vxor.u32 %v1012_v18, %v5089_v9  ;;  %v3234_v35 = vxor.u32 %v1013_v20, %v5090_v10  ;;  %v5096_v1 = vmul.u32 2146121005, %v5095_v60  ;;  %v5098_v18 = vmul.u32 2146121005, %v5097_v30 }
  0x8b   : > { %v3238_v33 = vxor.u32 %v1014_v3, %v5091_v12  ;;  %v3242_v27 = vxor.u32 %v1015_v16, %v5093_v26  ;;  %v5101_v20 = vmul.u32 2146121005, %v5100_v31  ;;  %v5104_v3 = vmul.u32 2146121005, %v5103_v32  ;;  %v5106_v16 = vld [vmem:[#allocation38_spill] sm:$0xff]  ;;  %v5109_v26 = vld [vmem:[#allocation39_spill] sm:$0xff] }
  0x8c   : > { %v3246_v5 = vxor.u32 %v1016_v17, %v5096_v1  ;;  %v3250_v24 = vxor.u32 %v1017_v8, %v5098_v18  ;;  %v5107_v12 = vmul.u32 2146121005, %v5106_v16  ;;  %v5110_v17 = vmul.u32 2146121005, %v5109_v26  ;;  %v5112_v1 = vld [vmem:[#allocation40_spill] sm:$0xff]  ;;  %v5115_v18 = vld [vmem:[#allocation41_spill] sm:$0xff] }
  0x8d   : > { %5094 = vst [vmem:[#allocation26_spill] sm:$0xff] %v3242_v27  ;;  %v3254_v7 = vxor.u32 %v1018_v19, %v5101_v20  ;;  %v3258_v9 = vxor.u32 %v1019_v21, %v5104_v3  ;;  %v5113_v8 = vmul.u32 2146121005, %v5112_v1  ;;  %v5116_v19 = vmul.u32 2146121005, %v5115_v18  ;;  %v5118_v20 = vld [vmem:[#allocation42_spill] sm:$0xff] }
  0x8e   : > { %5099 = vst [vmem:[#allocation27_spill] sm:$0xff] %v3250_v24  ;;  %v3262_v13 = vxor.u32 %v1020_v22, %v5107_v12  ;;  %v3266_v60 = vxor.u32 %v1021_v46, %v5110_v17  ;;  %v5119_v21 = vmul.u32 2146121005, %v5118_v20  ;;  %v5121_v3 = vld [vmem:[#allocation43_spill] sm:$0xff]  ;;  %v5124_v12 = vld [vmem:[#allocation44_spill] sm:$0xff]  ;;  %v3288_v17 = vxor.u32 %v1027_v0, %v995_v23 }
  0x8f   : > { %5102 = vst [vmem:[#allocation28_spill] sm:$0xff] %v3254_v7  ;;  %5105 = vst [vmem:[#allocation29_spill] sm:$0xff] %v3258_v9  ;;  %v3270_v30 = vxor.u32 %v1022_v11, %v5113_v8  ;;  %v3274_v31 = vxor.u32 %v1023_v45, %v5116_v19  ;;  %v5122_v16 = vmul.u32 2146121005, %v5121_v3  ;;  %v5125_v26 = vmul.u32 2146121005, %v5124_v12 }
  0x90   : > { %5108 = vst [vmem:[#allocation30_spill] sm:$0xff] %v3262_v13  ;;  %5111 = vst [vmem:[#allocation31_spill] sm:$0xff] %v3266_v60  ;;  %v3278_v32 = vxor.u32 %v1024_v51, %v5119_v21  ;;  %v3290_v1 = vxor.u32 %v1028_v49, %v996_v2  ;;  %v3292_v8 = vxor.u32 %v1029_v40, %v997_v58  ;;  %v4969_v51 = vmul.u32 2221713035, %v3202_v43 }
  0x91   : > { %5114 = vst [vmem:[#allocation32_spill] sm:$0xff] %v3270_v30  ;;  %5117 = vst [vmem:[#allocation33_spill] sm:$0xff] %v3274_v31  ;;  %v3282_v22 = vxor.u32 %v1025_v50, %v5122_v16  ;;  %v3286_v46 = vxor.u32 %v1026_v41, %v5125_v26  ;;  %v3294_v45 = vxor.u32 %v1030_v47, %v998_v59  ;;  %v4966_v50 = vmul.u32 2221713035, %v3206_v62 }
  0x92   : > { %5120 = vst [vmem:[#allocation34_spill] sm:$0xff] %v3278_v32  ;;  %5127 = vst [vmem:[#allocation37_spill] sm:$0xff] %v3288_v17  ;;  %v3297_v18 = vxor.u32 %v1031_v39, %v999_v63  ;;  %v3299_v19 = vxor.u32 %v1032_v42, %v1000_v57  ;;  %v4965_v41 = vmul.u32 2221713035, %v3210_v36  ;;  %v3303_v0 = vxor.u32 %v1033_v25, %v1001_v56 }
  0x93   : > { %5123 = vst [vmem:[#allocation35_spill] sm:$0xff] %v3282_v22  ;;  %5126 = vst [vmem:[#allocation36_spill] sm:$0xff] %v3286_v46  ;;  %v3305_v23 = vxor.u32 %v1034_v38, %v1002_v55  ;;  %v3307_v2 = vxor.u32 %v1035_v48, %v1003_v54  ;;  %v4967_v40 = vmul.u32 2221713035, %v3214_v34  ;;  %v3312_v39 = vxor.u32 %v1036_v52, %v1004_v53 }
  0x94   : > { %5128 = vst [vmem:[#allocation38_spill] sm:$0xff] %v3290_v1  ;;  %5129 = vst [vmem:[#allocation39_spill] sm:$0xff] %v3292_v8  ;;  %v4968_v42 = vmul.u32 2221713035, %v3218_v6  ;;  %v4970_v63 = vmul.u32 2221713035, %v3222_v28 }
  0x95   : > { %5130 = vst [vmem:[#allocation40_spill] sm:$0xff] %v3294_v45  ;;  %5131 = vst [vmem:[#allocation41_spill] sm:$0xff] %v3297_v18  ;;  %v4971_v25 = vmul.u32 2221713035, %v3226_v44  ;;  %v4972_v38 = vmul.u32 2221713035, %v3230_v14 }
  0x96   : > { %v379_v15 = vpop.permute.xlu0 %378  ;;  %5132 = vst [vmem:[#allocation42_spill] sm:$0xff] %v3303_v0  ;;  %v3322_v48 = vshrl.u32 %v4969_v51, 16  ;;  %v4973_v56 = vmul.u32 2221713035, %v3234_v35  ;;  %v4974_v52 = vmul.u32 2221713035, %v3238_v33 }
  0x97   : > { %v3328_v55 = vshrl.u32 %v4966_v50, 16  ;;  %v4976_v47 = vmul.u32 2221713035, %v3242_v27  ;;  %v3340_v21 = vshrl.u32 %v4967_v40, 16  ;;  %v3347_v12 = vshrl.u32 %v4968_v42, 16 }
  0x98   : > { %v3365_v51 = vshrl.u32 %v4972_v38, 16  ;;  %v5149_v16 = vmul.u32 2221713035, %v3262_v13  ;;  %v5154_v13 = vmul.u32 2221713035, %v3278_v32 }
  0x9a   : > { %v384_v58 = vpop.permute.xlu0 %383  ;;  %v1116_v38 = vshrl.u32 %v5149_v16, 16  ;;  %v1120_v16 = vshrl.u32 %v5154_v13, 16  ;;  %v5160_v13 = vmul.u32 2221713035, %v3292_v8 }
  0xeb   : > { %v555_v37 = vpop.f32.mrf.mxu0 }
  0xec   : > { %v3310_v59 = vadd.f32 %v555_v37, %v379_v15  ;;  %v389_v37 = vpop.permute.xlu1 %388 }
  0xed   : > { %v557_v61 = vpop.f32.mrf.mxu0 }
  0xee   : > { %5133 = vst [vmem:[#allocation43_spill] sm:$0xff] %v3310_v59  ;;  %v3316_v57 = vadd.f32 %v557_v61, %v379_v15  ;;  %v3332_v61 = vshrl.u32 %v4965_v41, 16  ;;  %v4977_v15 = vmul.u32 2221713035, %v3246_v5 }
  0xef   : > { %v559_v29 = vpop.f32.mrf.mxu0 }
  0xf0   : > { %5134 = vst [vmem:[#allocation44_spill] sm:$0xff] %v3316_v57  ;;  %v3334_v54 = vadd.f32 %v559_v29, %v384_v58  ;;  %v3351_v29 = vshrl.u32 %v4970_v63, 16  ;;  %v394_v42 = vpop.permute.xlu1 %393 }
  0xf1   : > { %v561_v4 = vpop.f32.mrf.mxu0 }
  0xf2   : > { %5135 = vst [vmem:[#allocation45_spill] sm:$0xff] %v3334_v54  ;;  %v3342_v3 = vadd.f32 %v561_v4, %v384_v58  ;;  %v3359_v4 = vshrl.u32 %v4971_v25, 16  ;;  %v3377_v58 = vshrl.u32 %v4974_v52, 16 }
  0xf3   : > { %v565_v10 = vpop.f32.mrf.mxu0 }
  0xf4   : > { %5136 = vst [vmem:[#allocation46_spill] sm:$0xff] %v3342_v3  ;;  %v3353_v26 = vadd.f32 %v565_v10, %v389_v37  ;;  %v3369_v10 = vshrl.u32 %v4973_v56, 16  ;;  %v3383_v56 = vshrl.u32 %v4976_v47, 16  ;;  %v5142_v47 = vmul.u32 2221713035, %v3250_v24 }
  0xf5   : > { %v567_v11 = vpop.f32.mrf.mxu0 }
  0xf6   : > { %5137 = vst [vmem:[#allocation47_spill] sm:$0xff] %v3353_v26  ;;  %v3371_v63 = vadd.f32 %v567_v11, %v389_v37  ;;  %5139 = vst [vmem:[#allocation49_spill] sm:$0xff] %v3383_v56  ;;  %v3387_v11 = vshrl.u32 %v4977_v15, 16  ;;  %v634_v37 = vmax.f32 %v3310_v59, %v3353_v26  ;;  %v3399_v56 = vshrl.u32 %v5142_v47, 16  ;;  %v399_v26 = vpop.permute.xlu0 %398  ;;  %v404_v47 = vpop.permute.xlu1 %403 }
  0xf7   : > { %v569_v20 = vpop.f32.mrf.mxu0  ;;  %v5144_v15 = vmul.u32 2221713035, %v3254_v7 }
  0xf8   : > { %5138 = vst [vmem:[#allocation48_spill] sm:$0xff] %v3371_v63  ;;  %5140 = vst [vmem:[#allocation50_spill] sm:$0xff] %v3387_v11  ;;  %v3391_v25 = vadd.f32 %v569_v20, %v394_v42  ;;  %v655_v20 = vmax.f32 %v3316_v57, %v3371_v63 }
  0xf9   : > { %v571_v49 = vpop.f32.mrf.mxu0  ;;  %5143 = vst [vmem:[#allocation52_spill] sm:$0xff] %v3399_v56  ;;  %v3403_v11 = vshrl.u32 %v5144_v15, 16  ;;  %v5148_v15 = vmul.u32 2221713035, %v3258_v9  ;;  %v5151_v56 = vmul.u32 2221713035, %v3266_v60 }
  0xfa   : > { %5141 = vst [vmem:[#allocation51_spill] sm:$0xff] %v3391_v25  ;;  %v3407_v59 = vadd.f32 %v571_v49, %v394_v42  ;;  %v635_v63 = vmax.f32 %v3334_v54, %v3391_v25  ;;  %v5153_v42 = vmul.u32 2221713035, %v3274_v31  ;;  %v409_v8 = vpop.permute.xlu0 %408 }
  0xfb   : > { %v575_v53 = vpop.f32.mrf.mxu0  ;;  %5145 = vst [vmem:[#allocation53_spill] sm:$0xff] %v3403_v11  ;;  %v1115_v11 = vshrl.u32 %v5148_v15, 16  ;;  %v1117_v7 = vshrl.u32 %v5151_v56, 16  ;;  %v5152_v15 = vmul.u32 2221713035, %v3270_v30 }
  0xfc   : > { %5146 = vst [vmem:[#allocation54_spill] sm:$0xff] %v3407_v59  ;;  %v3411_v27 = vadd.f32 %v575_v53, %v399_v26  ;;  %v656_v25 = vmax.f32 %v3342_v3, %v3407_v59  ;;  %v1119_v49 = vshrl.u32 %v5153_v42, 16  ;;  %v5156_v56 = vmul.u32 2221713035, %v3286_v46 }
  0xfd   : > { %v577_v41 = vpop.f32.mrf.mxu0  ;;  %v1118_v9 = vshrl.u32 %v5152_v15, 16  ;;  %v5157_v30 = vmul.u32 2221713035, %v3288_v17  ;;  %v5158_v3 = vmul.u32 2221713035, %v3290_v1 }
  0xfe   : > { %5147 = vst [vmem:[#allocation55_spill] sm:$0xff] %v3411_v27  ;;  %v3423_v53 = vadd.f32 %v577_v41, %v399_v26  ;;  %v5155_v41 = vmul.u32 2221713035, %v3282_v22  ;;  %v3439_v60 = vmax.f32 %v634_v37, %v3411_v27  ;;  %v1122_v15 = vshrl.u32 %v5156_v56, 16 }
  0xff   : > { %v579_v50 = vpop.f32.mrf.mxu0  ;;  %v1123_v59 = vshrl.u32 %v5157_v30, 16  ;;  %v1124_v31 = vshrl.u32 %v5158_v3, 16  ;;  %v1125_v22 = vshrl.u32 %v5160_v13, 16  ;;  %v5162_v37 = vmul.u32 2221713035, %v3297_v18 }
 0x100   : > { %5150 = vst [vmem:[#allocation56_spill] sm:$0xff] %v3423_v53  ;;  %v1121_v26 = vshrl.u32 %v5155_v41, 16  ;;  %v3447_v42 = vadd.f32 %v579_v50, %v404_v47  ;;  %v5161_v41 = vmul.u32 2221713035, %v3294_v45  ;;  %v3456_v56 = vmax.f32 %v655_v20, %v3423_v53 }
 0x101   : > { %v581_v52 = vpop.f32.mrf.mxu0  ;;  %v1127_v27 = vshrl.u32 %v5162_v37, 16  ;;  %v5163_v30 = vmul.u32 2221713035, %v3299_v19  ;;  %v5164_v3 = vmul.u32 2221713035, %v3303_v0 }
 0x102   : > { %5159 = vst [vmem:[#allocation57_spill] sm:$0xff] %v3447_v42  ;;  %v1126_v24 = vshrl.u32 %v5161_v41, 16  ;;  %v5165_v1 = vmul.u32 2221713035, %v3305_v23  ;;  %v3464_v13 = vadd.f32 %v581_v52, %v404_v47  ;;  %v5167_v41 = vmul.u32 2221713035, %v3307_v2 }
 0x103   : > { %v585_v40 = vpop.f32.mrf.mxu0  ;;  %v1128_v17 = vshrl.u32 %v5163_v30, 16  ;;  %v1129_v50 = vshrl.u32 %v5164_v3, 16  ;;  %v5168_v37 = vmul.u32 2221713035, %v3312_v39  ;;  %v5169_v53 = vmul.u32 2221713035, %v3202_v43 }
 0x104   : > { %v1130_v46 = vshrl.u32 %v5165_v1, 16  ;;  %5166 = vst [vmem:[#allocation58_spill] sm:$0xff] %v3464_v13  ;;  %v1131_v18 = vshrl.u32 %v5167_v41, 16  ;;  %v3475_v0 = vadd.f32 %v585_v40, %v409_v8  ;;  %v5171_v3 = vmul.u32 2221713035, %v3206_v62 }
 0x105   : > { %v587_v57 = vpop.f32.mrf.mxu0  ;;  %v1132_v20 = vshrl.u32 %v5168_v37, 16  ;;  %v3473_v30 = vxor.u32 %v3322_v48, %v5169_v53  ;;  %v5172_v52 = vmul.u32 2221713035, %v3210_v36  ;;  %v5173_v41 = vmul.u32 2221713035, %v3214_v34 }
 0x106   : > { %5170 = vst [vmem:[#allocation59_spill] sm:$0xff] %v3475_v0  ;;  %v3480_v1 = vxor.u32 %v3328_v55, %v5171_v3  ;;  %v3493_v43 = vmax.f32 %v635_v63, %v3447_v42  ;;  %v5174_v48 = vmul.u32 2221713035, %v3218_v6  ;;  %v5175_v55 = vmul.u32 2221713035, %v3222_v28  ;;  %v5183_v3 = vld [vmem:[#allocation49_spill] sm:$0xff] }
 0x107   : > { %v589_v54 = vpop.f32.mrf.mxu0  ;;  %v3485_v47 = vxor.u32 %v3332_v61, %v5172_v52  ;;  %v3490_v37 = vxor.u32 %v3340_v21, %v5173_v41  ;;  %v5176_v61 = vmul.u32 2221713035, %v3226_v44  ;;  %v3510_v21 = vadd.f32 %v587_v57, %v409_v8  ;;  %v414_v44 = vpop.permute.xlu1 %413  ;;  %v5181_v57 = vld [vmem:[#allocation26_spill] sm:$0xff]  ;;  %v5186_v41 = vld [vmem:[#allocation27_spill] sm:$0xff] }
 0x108   : > { %v3498_v62 = vxor.u32 %v3347_v12, %v5174_v48  ;;  %v3503_v36 = vxor.u32 %v3351_v29, %v5175_v55  ;;  %v5178_v63 = vmul.u32 2221713035, %v3230_v14  ;;  %v5179_v6 = vmul.u32 2221713035, %v3234_v35  ;;  %v5185_v52 = vld [vmem:[#allocation50_spill] sm:$0xff]  ;;  %v5188_v48 = vld [vmem:[#allocation52_spill] sm:$0xff] }
 0x109   : > { %v591_v32 = vpop.f32.mrf.mxu0  ;;  %v3508_v34 = vxor.u32 %v3359_v4, %v5176_v61  ;;  %5177 = vst [vmem:[#allocation60_spill] sm:$0xff] %v3510_v21  ;;  %v5180_v28 = vmul.u32 2221713035, %v3238_v33  ;;  %v3528_v4 = vmax.f32 %v656_v25, %v3464_v13  ;;  %v5182_v14 = vmul.u32 2221713035, %v5181_v57  ;;  %v5189_v55 = vld [vmem:[#allocation28_spill] sm:$0xff] }
 0x10a   : > { %v3515_v53 = vxor.u32 %v3365_v51, %v5178_v63  ;;  %v3520_v12 = vxor.u32 %v3369_v10, %v5179_v6  ;;  %v5184_v35 = vmul.u32 2221713035, %v3246_v5  ;;  %v5187_v33 = vmul.u32 2221713035, %v5186_v41  ;;  %v5191_v63 = vld [vmem:[#allocation53_spill] sm:$0xff]  ;;  %v5194_v5 = vld [vmem:[#allocation30_spill] sm:$0xff] }
 0x10b   : > { %v595_v45 = vpop.f32.mrf.mxu0  ;;  %v3525_v29 = vxor.u32 %v3377_v58, %v5180_v28  ;;  %v3533_v51 = vxor.u32 %v5183_v3, %v5182_v14  ;;  %v638_v25 = vmax.f32 %v3439_v60, %v3475_v0  ;;  %v5190_v61 = vmul.u32 2221713035, %v5189_v55  ;;  %v5192_v28 = vld [vmem:[#allocation29_spill] sm:$0xff]  ;;  %v5198_v60 = vld [vmem:[#allocation32_spill] sm:$0xff] }
 0x10c   : > { %v3538_v10 = vxor.u32 %v5185_v52, %v5184_v35  ;;  %v3543_v58 = vxor.u32 %v5188_v48, %v5187_v33  ;;  %v5193_v57 = vmul.u32 2221713035, %v5192_v28  ;;  %v5195_v3 = vmul.u32 2221713035, %v5194_v5  ;;  %v5196_v33 = vld [vmem:[#allocation31_spill] sm:$0xff] }
 0x10d   : > { %v597_v40 = vpop.f32.mrf.mxu0  ;;  %v3550_v6 = vxor.u32 %v5191_v63, %v5190_v61  ;;  %v3560_v52 = vadd.f32 %v589_v54, %v414_v44  ;;  %v5197_v48 = vmul.u32 2221713035, %v5196_v33  ;;  %v5199_v55 = vmul.u32 2221713035, %v5198_v60  ;;  %v5200_v61 = vld [vmem:[#allocation33_spill] sm:$0xff]  ;;  %v5204_v5 = vld [vmem:[#allocation35_spill] sm:$0xff] }
 0x10e   : > { %v3554_v14 = vxor.u32 %v1115_v11, %v5193_v57  ;;  %v3558_v35 = vxor.u32 %v1116_v38, %v5195_v3  ;;  %v5201_v63 = vmul.u32 2221713035, %v5200_v61  ;;  %v659_v11 = vmax.f32 %v3456_v56, %v3510_v21  ;;  %v5202_v38 = vld [vmem:[#allocation34_spill] sm:$0xff]  ;;  %v5209_v61 = vld [vmem:[#allocation37_spill] sm:$0xff] }
 0x10f   : > { %v599_v8 = vpop.f32.mrf.mxu0  ;;  %v3564_v13 = vxor.u32 %v1117_v7, %v5197_v48  ;;  %v3568_v0 = vxor.u32 %v1118_v9, %v5199_v55  ;;  %v5203_v57 = vmul.u32 2221713035, %v5202_v38  ;;  %v5205_v3 = vmul.u32 2221713035, %v5204_v5  ;;  %v5206_v7 = vld [vmem:[#allocation36_spill] sm:$0xff]  ;;  %v419_v9 = vpop.permute.xlu0 %418  ;;  %v5211_v56 = vld [vmem:[#allocation38_spill] sm:$0xff] }
 0x110   : > { %v3572_v28 = vxor.u32 %v1119_v49, %v5201_v63  ;;  %v5207_v48 = vmul.u32 2221713035, %v5206_v7  ;;  %v3588_v55 = vadd.f32 %v591_v32, %v414_v44  ;;  %v5210_v63 = vmul.u32 2221713035, %v5209_v61  ;;  %v5217_v32 = vld [vmem:[#allocation41_spill] sm:$0xff] }
 0x111   : > { %v601_v41 = vpop.f32.mrf.mxu0  ;;  %v3578_v54 = vxor.u32 %v1120_v16, %v5203_v57  ;;  %v3582_v33 = vxor.u32 %v1121_v26, %v5205_v3  ;;  %v5212_v38 = vmul.u32 2221713035, %v5211_v56  ;;  %v5213_v57 = vld [vmem:[#allocation39_spill] sm:$0xff]  ;;  %v3602_v3 = vadd.f32 %v595_v45, %v419_v9  ;;  %v5220_v56 = vld [vmem:[#allocation42_spill] sm:$0xff] }
 0x112   : > { %v3586_v60 = vxor.u32 %v1122_v15, %v5207_v48  ;;  %5208 = vst [vmem:[#allocation26_spill] sm:$0xff] %v3588_v55  ;;  %v3592_v42 = vxor.u32 %v1123_v59, %v5210_v63  ;;  %v5214_v5 = vmul.u32 2221713035, %v5213_v57  ;;  %v5215_v15 = vld [vmem:[#allocation40_spill] sm:$0xff]  ;;  %v5218_v44 = vmul.u32 2221713035, %v5217_v32 }
 0x113   : > { %v605_v49 = vpop.f32.mrf.mxu0  ;;  %v3596_v16 = vxor.u32 %v1124_v31, %v5212_v38  ;;  %v5216_v7 = vmul.u32 2221713035, %v5215_v15  ;;  %v5219_v59 = vmul.u32 2221713035, %v3299_v19  ;;  %v424_v31 = vpop.permute.xlu1 %423  ;;  %v639_v63 = vmax.f32 %v3493_v43, %v3560_v52 }
 0x114   : > { %v3600_v26 = vxor.u32 %v1125_v22, %v5214_v5  ;;  %v3610_v21 = vxor.u32 %v1127_v27, %v5218_v44  ;;  %v5221_v45 = vmul.u32 2221713035, %v5220_v56  ;;  %v5223_v27 = vmul.u32 2221713035, %v3307_v2 }
 0x115   : > { %v3606_v48 = vxor.u32 %v1126_v24, %v5216_v7  ;;  %v3614_v61 = vxor.u32 %v1128_v17, %v5219_v59  ;;  %v607_v22 = vpop.f32.mrf.mxu0  ;;  %v5222_v24 = vmul.u32 2221713035, %v3305_v23  ;;  %v3630_v19 = vadd.f32 %v597_v40, %v419_v9 }
 0x116   : > { %v3620_v38 = vxor.u32 %v1129_v50, %v5221_v45  ;;  %v3628_v5 = vxor.u32 %v1131_v18, %v5223_v27  ;;  %v5225_v17 = vmul.u32 2221713035, %v3312_v39  ;;  %v1165_v43 = vshrl.u32 %v3473_v30, 8 }
 0x117   : > { %v3624_v57 = vxor.u32 %v1130_v46, %v5222_v24  ;;  %5224 = vst [vmem:[#allocation49_spill] sm:$0xff] %v3630_v19  ;;  %v1166_v7 = vshrl.u32 %v3480_v1, 8  ;;  %v660_v50 = vmax.f32 %v3528_v4, %v3588_v55  ;;  %v609_v23 = vpop.f32.mrf.mxu0  ;;  %v1167_v46 = vshrl.u32 %v3485_v47, 8  ;;  %v429_v1 = vpop.permute.xlu0 %428 }
 0x118   : > { %v3634_v15 = vxor.u32 %v1132_v20, %v5225_v17  ;;  %v1168_v2 = vshrl.u32 %v3490_v37, 8  ;;  %v1169_v18 = vshrl.u32 %v3498_v62, 8  ;;  %v3644_v40 = vmax.f32 %v638_v25, %v3602_v3 }
 0x119   : > { %v1170_v39 = vshrl.u32 %v3503_v36, 8  ;;  %v1171_v20 = vshrl.u32 %v3508_v34, 8  ;;  %v1172_v30 = vshrl.u32 %v3515_v53, 8  ;;  %v3649_v9 = vadd.f32 %v599_v8, %v424_v31  ;;  %v611_v4 = vpop.f32.mrf.mxu0  ;;  %v434_v53 = vpop.permute.xlu1 %433 }
 0x11a   : > { %v1173_v32 = vshrl.u32 %v3520_v12, 8  ;;  %v1174_v47 = vshrl.u32 %v3525_v29, 8  ;;  %v1175_v37 = vshrl.u32 %v3533_v51, 8  ;;  %v3655_v62 = vmax.f32 %v659_v11, %v3630_v19 }
 0x11b   : > { %5226 = vst [vmem:[#allocation50_spill] sm:$0xff] %v3649_v9  ;;  %v1176_v25 = vshrl.u32 %v3538_v10, 8  ;;  %v1177_v36 = vshrl.u32 %v3543_v58, 8  ;;  %v1178_v34 = vshrl.u32 %v3550_v6, 8  ;;  %v3660_v44 = vadd.f32 %v601_v41, %v424_v31  ;;  %v615_v8 = vpop.f32.mrf.mxu0 }
 0x11c   : > { %v1179_v59 = vshrl.u32 %v3554_v14, 8  ;;  %v1180_v12 = vshrl.u32 %v3558_v35, 8  ;;  %v1181_v29 = vshrl.u32 %v3564_v13, 8  ;;  %v3665_v51 = vadd.f32 %v605_v49, %v429_v1 }
 0x11d   : > { %5227 = vst [vmem:[#allocation27_spill] sm:$0xff] %v3660_v44  ;;  %v1182_v11 = vshrl.u32 %v3568_v0, 8  ;;  %v1183_v10 = vshrl.u32 %v3572_v28, 8  ;;  %v1184_v58 = vshrl.u32 %v3578_v54, 8  ;;  %v641_v6 = vmax.f32 %v639_v63, %v3649_v9  ;;  %v617_v56 = vpop.f32.mrf.mxu0  ;;  %v439_v28 = vpop.permute.xlu0 %438 }
 0x11e   : > { %5228 = vst [vmem:[#allocation52_spill] sm:$0xff] %v3665_v51  ;;  %v1185_v41 = vshrl.u32 %v3582_v33, 8  ;;  %v3674_v35 = vadd.f32 %v607_v22, %v429_v1  ;;  %v1188_v13 = vshrl.u32 %v3596_v16, 8  ;;  %v1189_v49 = vshrl.u32 %v3600_v26, 8  ;;  %v444_v17 = vpop.permute.xlu1 %443 }
 0x11f   : > { %v662_v54 = vmax.f32 %v660_v50, %v3660_v44  ;;  %v619_v45 = vpop.f32.mrf.mxu0  ;;  %v1191_v63 = vshrl.u32 %v3610_v21, 8  ;;  %v1192_v33 = vshrl.u32 %v3614_v61, 8  ;;  %v1193_v24 = vshrl.u32 %v3620_v38, 8 }
 0x120   : > { %v642_v22 = vmax.f32 %v3644_v40, %v3665_v51  ;;  %v1194_v27 = vshrl.u32 %v3624_v57, 8  ;;  %v3688_v1 = vadd.f32 %v609_v23, %v434_v53  ;;  %v1197_v0 = vcvt.s32.f32 %v1165_v43 }
 0x121   : > { %v621_v50 = vpop.f32.mrf.mxu0  ;;  %v1198_v14 = vcvt.s32.f32 %v1166_v7  ;;  %v1199_v21 = vcvt.s32.f32 %v1167_v46  ;;  %v663_v61 = vmax.f32 %v3655_v62, %v3674_v35  ;;  %v1200_v38 = vcvt.s32.f32 %v1168_v2  ;;  %v449_v7 = vpop.permute.xlu0 %448 }
 0x122   : > { %v1201_v31 = vcvt.s32.f32 %v1169_v18  ;;  %v1202_v44 = vcvt.s32.f32 %v1170_v39  ;;  %v3692_v40 = vadd.f32 %v611_v4, %v434_v53  ;;  %v1203_v19 = vcvt.s32.f32 %v1171_v20 }
 0x123   : > { %v625_v57 = vpop.f32.mrf.mxu0  ;;  %v1204_v16 = vcvt.s32.f32 %v1172_v30  ;;  %v1205_v55 = vcvt.s32.f32 %v1173_v32  ;;  %v3694_v26 = vadd.f32 %v615_v8, %v439_v28  ;;  %v3696_v23 = vadd.f32 %v619_v45, %v444_v17  ;;  %v454_v32 = vpop.permute.xlu1 %453 }
 0x124   : > { %v1206_v51 = vcvt.s32.f32 %v1174_v47  ;;  %v1207_v43 = vcvt.s32.f32 %v1175_v37  ;;  %v643_v46 = vmax.f32 %v641_v6, %v3688_v1  ;;  %v3699_v9 = vadd.f32 %v617_v56, %v439_v28 }
 0x125   : > { %v627_v2 = vpop.f32.mrf.mxu0  ;;  %v1208_v18 = vcvt.s32.f32 %v1176_v25  ;;  %v1209_v39 = vcvt.s32.f32 %v1177_v36  ;;  %v3701_v4 = vadd.f32 %v621_v50, %v444_v17  ;;  %v3703_v62 = vadd.f32 %v625_v57, %v449_v7 }
 0x126   : > { %v1210_v20 = vcvt.s32.f32 %v1178_v34  ;;  %v1211_v30 = vcvt.s32.f32 %v1179_v59  ;;  %v664_v53 = vmax.f32 %v662_v54, %v3692_v40  ;;  %v1212_v47 = vcvt.s32.f32 %v1180_v12 }
 0x127   : > { %5229 = vst [vmem:[#allocation28_spill] sm:$0xff] %v3701_v4  ;;  %v629_v8 = vpop.f32.mrf.mxu0  ;;  %v1213_v37 = vcvt.s32.f32 %v1181_v29  ;;  %v1214_v45 = vcvt.s32.f32 %v1182_v11  ;;  %v644_v6 = vmax.f32 %v642_v22, %v3694_v26  ;;  %v645_v56 = vmax.f32 %v643_v46, %v3696_v23 }
 0x128   : > { %v3708_v28 = vadd.f32 %v627_v2, %v449_v7  ;;  %v3710_v25 = vadd.f32 %v629_v8, %v454_v32  ;;  %v665_v36 = vmax.f32 %v663_v61, %v3699_v9  ;;  %v1215_v34 = vcvt.s32.f32 %v1183_v10 }
 0x129   : > { %v631_v17 = vpop.f32.mrf.mxu0  ;;  %v1216_v59 = vcvt.s32.f32 %v1184_v58  ;;  %v1217_v50 = vcvt.s32.f32 %v1185_v41  ;;  %v666_v54 = vmax.f32 %v664_v53, %v3701_v4  ;;  %v646_v12 = vmax.f32 %v644_v6, %v3703_v62 }
 0x12a   : > { %5230 = vst [vmem:[#allocation53_spill] sm:$0xff] %v3708_v28  ;;  %v647_v29 = vmax.f32 %v645_v56, %v3710_v25  ;;  %v3716_v11 = vadd.f32 %v631_v17, %v454_v32  ;;  %v5232_v22 = vshrl.u32 %v3586_v60, 8  ;;  %v5233_v7 = vshrl.u32 %v3592_v42, 8 }
 0x12b   : > { %v1220_v2 = vcvt.s32.f32 %v1188_v13  ;;  %v1221_v61 = vcvt.s32.f32 %v1189_v49  ;;  %v667_v10 = vmax.f32 %v665_v36, %v3708_v28  ;;  %v5234_v53 = vshrl.u32 %v3606_v48, 8 }
 0x12c   : > { %5231 = vst [vmem:[#allocation29_spill] sm:$0xff] %v3716_v11  ;;  %v1218_v57 = vcvt.s32.f32 %v5232_v22  ;;  %v1219_v46 = vcvt.s32.f32 %v5233_v7  ;;  %v648_v58 = vmax.f32 %v646_v12, %v647_v29  ;;  %v668_v41 = vmax.f32 %v666_v54, %v3716_v11 }
 0x12d   : > { %v1222_v8 = vcvt.s32.f32 %v5234_v53  ;;  %v1223_v6 = vcvt.s32.f32 %v1191_v63  ;;  %v1224_v56 = vcvt.s32.f32 %v1192_v33  ;;  %v1225_v32 = vcvt.s32.f32 %v1193_v24 }
 0x12e   : > { %v1226_v17 = vcvt.s32.f32 %v1194_v27  ;;  %v649_v4 = vrot.slane %v648_v58, 4  ;;  %v669_v60 = vmax.f32 %v667_v10, %v668_v41  ;;  %v5235_v22 = vshrl.u32 %v3628_v5, 8 }
 0x12f   : > { %v5236_v13 = vshrl.u32 %v3634_v15, 8  ;;  %v1229_v7 = vadd.f32 0.5, %v1197_v0  ;;  %v1230_v36 = vadd.f32 0.5, %v1198_v14  ;;  %v1231_v12 = vadd.f32 0.5, %v1199_v21 }
 0x130   : > { %v1227_v42 = vcvt.s32.f32 %v5235_v22  ;;  %v1232_v29 = vadd.f32 0.5, %v1200_v38  ;;  %v650_v54 = vmax.f32 %v648_v58, %v649_v4  ;;  %v670_v11 = vrot.slane %v669_v60, 4 }
 0x131   : > { %v1228_v49 = vcvt.s32.f32 %v5236_v13  ;;  %v1233_v48 = vadd.f32 0.5, %v1201_v31  ;;  %v1234_v53 = vadd.f32 0.5, %v1202_v44  ;;  %v1235_v63 = vadd.f32 0.5, %v1203_v19 }
 0x132   : > { %v1236_v33 = vadd.f32 0.5, %v1204_v16  ;;  %v1237_v24 = vadd.f32 0.5, %v1205_v55  ;;  %v1238_v27 = vadd.f32 0.5, %v1206_v51  ;;  %v651_v28 = vrot.slane %v650_v54, 2 }
 0x133   : > { %v1239_v10 = vadd.f32 0.5, %v1207_v43  ;;  %v3730_v41 = vadd.f32 0.5, %v1208_v18  ;;  %v3732_v5 = vadd.f32 0.5, %v1209_v39  ;;  %v3734_v15 = vadd.f32 0.5, %v1210_v20 }
 0x134   : > { %v3736_v0 = vadd.f32 0.5, %v1211_v30  ;;  %v3738_v14 = vadd.f32 0.5, %v1212_v47  ;;  %v3740_v21 = vadd.f32 0.5, %v1213_v37  ;;  %v652_v31 = vmax.f32 %v650_v54, %v651_v28 }
 0x135   : > { %v671_v44 = vmax.f32 %v669_v60, %v670_v11  ;;  %v3742_v19 = vadd.f32 0.5, %v1214_v45  ;;  %v3744_v55 = vadd.f32 0.5, %v1215_v34  ;;  %v3746_v51 = vadd.f32 0.5, %v1216_v59 }
 0x136   : > { %v3748_v16 = vadd.f32 0.5, %v1217_v50  ;;  %v3750_v38 = vadd.f32 0.5, %v1218_v57  ;;  %v3752_v43 = vadd.f32 0.5, %v1219_v46  ;;  %v653_v18 = vrot.slane %v652_v31, 1 }
 0x137   : > { %v3754_v39 = vadd.f32 0.5, %v1220_v2  ;;  %v3756_v4 = vadd.f32 0.5, %v1221_v61  ;;  %v1261_v20 = vmul.f32 5.9604645e-08, %v1229_v7  ;;  %v3758_v30 = vadd.f32 0.5, %v1222_v8  ;;  %v5237_v61 = vld [vmem:[#allocation43_spill] sm:$0xff]  ;;  %v5238_v8 = vld [vmem:[#allocation45_spill] sm:$0xff] }
 0x138   : > { %v3760_v47 = vadd.f32 0.5, %v1223_v6  ;;  %v3762_v37 = vadd.f32 0.5, %v1224_v56  ;;  %v1262_v45 = vmul.f32 5.9604645e-08, %v1230_v36  ;;  %v654_v28 = vmax.f32 %v652_v31, %v653_v18  ;;  %v5239_v56 = vld [vmem:[#allocation47_spill] sm:$0xff] }
 0x139   : > { %v672_v34 = vrot.slane %v671_v44, 2  ;;  %v3764_v59 = vadd.f32 0.5, %v1225_v32  ;;  %v1263_v50 = vmul.f32 5.9604645e-08, %v1231_v12  ;;  %v3766_v11 = vadd.f32 0.5, %v1226_v17  ;;  %v5240_v32 = vld [vmem:[#allocation51_spill] sm:$0xff]  ;;  %v5242_v12 = vld [vmem:[#allocation57_spill] sm:$0xff] }
 0x13a   : > { %v3768_v57 = vadd.f32 0.5, %v1227_v42  ;;  %v3770_v46 = vadd.f32 0.5, %v1228_v49  ;;  %v1264_v2 = vmul.f32 5.9604645e-08, %v1232_v29  ;;  %v3773_v58 = vsub.f32 %v5237_v61, %v654_v28  ;;  %v5241_v42 = vld [vmem:[#allocation55_spill] sm:$0xff] }
 0x13b   : > { %v3776_v6 = vsub.f32 %v5238_v8, %v654_v28  ;;  %v3779_v60 = vsub.f32 %v5239_v56, %v654_v28  ;;  %2310 = vlog2.f32 %v1261_v20  ;;  %v3782_v22 = vsub.f32 %v5240_v32, %v654_v28  ;;  %v5243_v18 = vld [vmem:[#allocation59_spill] sm:$0xff]  ;;  %v5245_v56 = vld [vmem:[#allocation52_spill] sm:$0xff] }
 0x13c   : > { %v1265_v17 = vmul.f32 5.9604645e-08, %v1233_v48  ;;  %v3784_v13 = vmul.f32 5.9604645e-08, %v1234_v53  ;;  %2312 = vlog2.f32 %v1262_v45  ;;  %v3787_v49 = vsub.f32 %v5241_v42, %v654_v28 }
 0x13d   : > { %v673_v7 = vmax.f32 %v671_v44, %v672_v34  ;;  %v3789_v36 = vmul.f32 5.9604645e-08, %v1235_v63  ;;  %2314 = vlog2.f32 %v1263_v50  ;;  %v3792_v29 = vsub.f32 %v5242_v12, %v654_v28 }
 0x13e   : > { %v3794_v54 = vmul.f32 5.9604645e-08, %v1236_v33  ;;  %v3796_v31 = vmul.f32 5.9604645e-08, %v1237_v24  ;;  %2316 = vlog2.f32 %v1264_v2  ;;  %v3799_v48 = vsub.f32 %v5243_v18, %v654_v28  ;;  %v5244_v2 = vld [vmem:[#allocation50_spill] sm:$0xff] }
 0x13f   : > { %v708_v53 = vmul.f32 1.442695, %v3773_v58  ;;  %v712_v20 = vmul.f32 1.442695, %v3776_v6  ;;  %v716_v44 = vmul.f32 1.442695, %v3779_v60  ;;  %v3805_v63 = vsub.f32 %v3560_v52, %v654_v28 }
 0x140   : > { %v720_v45 = vmul.f32 1.442695, %v3782_v22  ;;  %v3808_v34 = vmul.f32 5.9604645e-08, %v1238_v27  ;;  %2318 = vlog2.f32 %v1265_v17  ;;  %v3811_v33 = vsub.f32 %v3602_v3, %v654_v28 }
 0x141   : > { %2320 = vpow2.f32 %v708_v53  ;;  %v724_v24 = vmul.f32 1.442695, %v3787_v49  ;;  %v674_v50 = vrot.slane %v673_v7, 1  ;;  %v3815_v61 = vsub.f32 %v5244_v2, %v654_v28 }
 0x142   : > { %2322 = vpow2.f32 %v712_v20  ;;  %v728_v8 = vmul.f32 1.442695, %v3792_v29  ;;  %v3818_v52 = vmul.f32 5.9604645e-08, %v1239_v10  ;;  %v3821_v32 = vsub.f32 %v5245_v56, %v654_v28 }
 0x143   : > { %2324 = vpow2.f32 %v716_v44  ;;  %v732_v27 = vmul.f32 1.442695, %v3799_v48  ;;  %v3825_v3 = vmul.f32 5.9604645e-08, %v3730_v41  ;;  %v3828_v17 = vsub.f32 %v3688_v1, %v654_v28 }
 0x144   : > { %2326 = vpow2.f32 %v720_v45  ;;  %v736_v42 = vmul.f32 1.442695, %v3805_v63  ;;  %v3832_v12 = vmul.f32 5.9604645e-08, %v3732_v5  ;;  %v3835_v10 = vsub.f32 %v3694_v26, %v654_v28 }
 0x145   : > { %2328 = vpow2.f32 %v724_v24  ;;  %v740_v18 = vmul.f32 1.442695, %v3811_v33  ;;  %v3838_v53 = vmax.f32 %v673_v7, %v674_v50  ;;  %v3841_v41 = vsub.f32 %v3696_v23, %v654_v28  ;;  %v5254_v50 = vld [vmem:[#allocation44_spill] sm:$0xff] }
 0x146   : > { %5246 = vst [vmem:[#allocation30_spill] sm:$0xff] %v3832_v12  ;;  %5247 = vst [vmem:[#allocation31_spill] sm:$0xff] %v3835_v10  ;;  %2330 = vpow2.f32 %v728_v8  ;;  %v744_v1 = vmul.f32 1.442695, %v3815_v61  ;;  %v3845_v20 = vmul.f32 5.9604645e-08, %v3734_v15  ;;  %v3848_v5 = vsub.f32 %v3703_v62, %v654_v28 }
 0x147   : > { %5248 = vst [vmem:[#allocation32_spill] sm:$0xff] %v3841_v41  ;;  %2332 = vpow2.f32 %v732_v27  ;;  %v748_v26 = vmul.f32 1.442695, %v3821_v32  ;;  %v3852_v44 = vmul.f32 5.9604645e-08, %v3736_v0  ;;  %v3857_v23 = vsub.f32 %v3710_v25, %v654_v28 }
 0x148   : > { %5249 = vst [vmem:[#allocation33_spill] sm:$0xff] %v3845_v20  ;;  %5250 = vst [vmem:[#allocation34_spill] sm:$0xff] %v3848_v5  ;;  %v3854_v7 = vpop.eup %2310  ;;  %2334 = vpow2.f32 %v736_v42  ;;  %v752_v45 = vmul.f32 1.442695, %v3828_v17  ;;  %v3861_v15 = vmul.f32 5.9604645e-08, %v3738_v14  ;;  %v3868_v0 = vsub.f32 %v5254_v50, %v3838_v53  ;;  %v5257_v14 = vld [vmem:[#allocation46_spill] sm:$0xff] }
 0x149   : > { %5251 = vst [vmem:[#allocation35_spill] sm:$0xff] %v3852_v44  ;;  %5252 = vst [vmem:[#allocation36_spill] sm:$0xff] %v3857_v23  ;;  %v3863_v24 = vpop.eup %2312  ;;  %2336 = vpow2.f32 %v740_v18  ;;  %v756_v62 = vmul.f32 1.442695, %v3835_v10  ;;  %v3871_v2 = vmul.f32 5.9604645e-08, %v3740_v21  ;;  %v3878_v8 = vsub.f32 %v5257_v14, %v3838_v53  ;;  %v5260_v21 = vld [vmem:[#allocation48_spill] sm:$0xff] }
 0x14a   : > { %5253 = vst [vmem:[#allocation37_spill] sm:$0xff] %v3861_v15  ;;  %v3873_v25 = vpop.eup %2314  ;;  %2338 = vpow2.f32 %v744_v1  ;;  %v760_v28 = vmul.f32 1.442695, %v3841_v41  ;;  %v3881_v56 = vmul.f32 5.9604645e-08, %v3742_v19  ;;  %v764_v42 = vmul.f32 1.442695, %v3848_v5 }
 0x14b   : > { %5255 = vst [vmem:[#allocation38_spill] sm:$0xff] %v3871_v2  ;;  %5256 = vst [vmem:[#allocation39_spill] sm:$0xff] %v3873_v25  ;;  %v3883_v27 = vpop.eup %2316  ;;  %2340 = vpow2.f32 %v748_v26  ;;  %v3888_v18 = vsub.f32 %v5260_v21, %v3838_v53  ;;  %v3891_v1 = vmul.f32 5.9604645e-08, %v3744_v55  ;;  %v768_v50 = vmul.f32 1.442695, %v3857_v23  ;;  %v5262_v14 = vld [vmem:[#allocation54_spill] sm:$0xff] }
 0x14c   : > { %5258 = vst [vmem:[#allocation40_spill] sm:$0xff] %v3881_v56  ;;  %5259 = vst [vmem:[#allocation41_spill] sm:$0xff] %v3883_v27  ;;  %2342 = vpow2.f32 %v752_v45  ;;  %v3896_v41 = vsub.f32 %v5262_v14, %v3838_v53  ;;  %v3899_v19 = vmul.f32 5.9604645e-08, %v3746_v51  ;;  %v5265_v5 = vld [vmem:[#allocation56_spill] sm:$0xff]  ;;  %v710_v55 = vmul.f32 1.442695, %v3868_v0 }
 0x14d   : > { %5261 = vst [vmem:[#allocation42_spill] sm:$0xff] %v3891_v1  ;;  %v3901_v26 = vpop.eup %2318  ;;  %2344 = vpow2.f32 %v756_v62  ;;  %v3905_v21 = vsub.f32 %v5265_v5, %v3838_v53  ;;  %v3909_v45 = vmul.f32 5.9604645e-08, %v3748_v16  ;;  %v5268_v14 = vld [vmem:[#allocation58_spill] sm:$0xff]  ;;  %v714_v51 = vmul.f32 1.442695, %v3878_v8  ;;  %v5271_v16 = vld [vmem:[#allocation60_spill] sm:$0xff] }
 0x14e   : > { %5263 = vst [vmem:[#allocation43_spill] sm:$0xff] %v3899_v19  ;;  %5264 = vst [vmem:[#allocation45_spill] sm:$0xff] %v3901_v26  ;;  %v3911_v23 = vpop.eup %2320  ;;  %2346 = vpow2.f32 %v760_v28  ;;  %v3915_v1 = vsub.f32 %v5268_v14, %v3838_v53  ;;  %v3919_v62 = vmul.f32 5.9604645e-08, %v3750_v38  ;;  %v718_v28 = vmul.f32 1.442695, %v3888_v18  ;;  %v5273_v38 = vld [vmem:[#allocation26_spill] sm:$0xff] }
 0x14f   : > { %5266 = vst [vmem:[#allocation47_spill] sm:$0xff] %v3909_v45  ;;  %5267 = vst [vmem:[#allocation51_spill] sm:$0xff] %v3911_v23  ;;  %v3921_v19 = vpop.eup %2322  ;;  %2348 = vpow2.f32 %v764_v42  ;;  %v1818_v5 = vmul.f32 %v3911_v23, %v3773_v58  ;;  %v3927_v45 = vsub.f32 %v5271_v16, %v3838_v53  ;;  %v722_v42 = vmul.f32 1.442695, %v3896_v41  ;;  %v5275_v58 = vld [vmem:[#allocation49_spill] sm:$0xff]  ;;  %v5277_v26 = vld [vmem:[#allocation27_spill] sm:$0xff] }
 0x150   : > { %5269 = vst [vmem:[#allocation55_spill] sm:$0xff] %v3919_v62  ;;  %5270 = vst [vmem:[#allocation57_spill] sm:$0xff] %v3921_v19  ;;  %v3930_v56 = vpop.eup %2324  ;;  %2350 = vpow2.f32 %v768_v50  ;;  %v1820_v14 = vmul.f32 %v3921_v19, %v3776_v6  ;;  %v3936_v62 = vsub.f32 %v5273_v38, %v3838_v53  ;;  %v3943_v16 = vsub.f32 %v5275_v58, %v3838_v53 }
 0x151   : > { %5272 = vst [vmem:[#allocation59_spill] sm:$0xff] %v3927_v45  ;;  %v3939_v2 = vpop.eup %2326  ;;  %v3947_v15 = vsub.f32 %v5277_v26, %v3838_v53  ;;  %2352 = vpow2.f32 %v710_v55  ;;  %v726_v50 = vmul.f32 1.442695, %v3905_v21  ;;  %v1822_v38 = vmul.f32 %v3930_v56, %v3779_v60 }
 0x152   : > { %5274 = vst [vmem:[#allocation50_spill] sm:$0xff] %v3936_v62  ;;  %5276 = vst [vmem:[#allocation52_spill] sm:$0xff] %v3943_v16  ;;  %v3950_v6 = vpop.eup %2328  ;;  %v1850_v27 = vadd.f32 %v1820_v14, %v1818_v5  ;;  %2354 = vpow2.f32 %v714_v51  ;;  %v730_v44 = vmul.f32 1.442695, %v3915_v1  ;;  %v3959_v58 = vsub.f32 %v3674_v35, %v3838_v53 }
 0x153   : > { %v3955_v25 = vpop.eup %2330  ;;  %v3963_v26 = vsub.f32 %v3692_v40, %v3838_v53  ;;  %2356 = vpow2.f32 %v718_v28  ;;  %v734_v55 = vmul.f32 1.442695, %v3927_v45  ;;  %v1824_v60 = vmul.f32 %v3939_v2, %v3782_v22  ;;  %v5282_v40 = vld [vmem:[#allocation28_spill] sm:$0xff] }
 0x154   : > { %5278 = vst [vmem:[#allocation44_spill] sm:$0xff] %v3955_v25  ;;  %5279 = vst [vmem:[#allocation46_spill] sm:$0xff] %v3959_v58  ;;  %v3966_v20 = vpop.eup %2332  ;;  %v1851_v51 = vadd.f32 %v1850_v27, %v1822_v38  ;;  %2358 = vpow2.f32 %v722_v42  ;;  %v738_v5 = vmul.f32 1.442695, %v3936_v62  ;;  %v3975_v35 = vsub.f32 %v3699_v9, %v3838_v53  ;;  %v5286_v9 = vld [vmem:[#allocation53_spill] sm:$0xff] }
 0x155   : > { %5280 = vst [vmem:[#allocation48_spill] sm:$0xff] %v3966_v20  ;;  %v3971_v14 = vpop.eup %2334  ;;  %v3979_v28 = vsub.f32 %v5282_v40, %v3838_v53  ;;  %2360 = vpow2.f32 %v726_v50  ;;  %v742_v45 = vmul.f32 1.442695, %v3943_v16  ;;  %v1826_v22 = vmul.f32 %v3950_v6, %v3787_v49  ;;  %v5287_v40 = vld [vmem:[#allocation29_spill] sm:$0xff] }
 0x156   : > { %5281 = vst [vmem:[#allocation54_spill] sm:$0xff] %v3971_v14  ;;  %v3982_v10 = vpop.eup %2336  ;;  %v1852_v27 = vadd.f32 %v1851_v51, %v1824_v60  ;;  %2362 = vpow2.f32 %v730_v44  ;;  %v746_v42 = vmul.f32 1.442695, %v3947_v15  ;;  %v3991_v62 = vsub.f32 %v5286_v9, %v3838_v53 }
 0x157   : > { %5283 = vst [vmem:[#allocation56_spill] sm:$0xff] %v3979_v28  ;;  %5284 = vst [vmem:[#allocation58_spill] sm:$0xff] %v3982_v10  ;;  %v3987_v38 = vpop.eup %2338  ;;  %v3995_v50 = vsub.f32 %v5287_v40, %v3838_v53  ;;  %2364 = vpow2.f32 %v734_v55  ;;  %v750_v16 = vmul.f32 1.442695, %v3959_v58  ;;  %v1828_v49 = vmul.f32 %v3955_v25, %v3792_v29 }
 0x158   : > { %5285 = vst [vmem:[#allocation60_spill] sm:$0xff] %v3987_v38  ;;  %v3998_v12 = vpop.eup %2340  ;;  %v1853_v44 = vadd.f32 %v1852_v27, %v1826_v22  ;;  %2366 = vpow2.f32 %v738_v5  ;;  %v754_v60 = vmul.f32 1.442695, %v3963_v26  ;;  %v758_v9 = vmul.f32 1.442695, %v3975_v35 }
 0x159   : > { %5288 = vst [vmem:[#allocation26_spill] sm:$0xff] %v3998_v12  ;;  %v4003_v51 = vpop.eup %2342  ;;  %2368 = vpow2.f32 %v742_v45  ;;  %v762_v53 = vmul.f32 1.442695, %v3979_v28  ;;  %v4008_v55 = vmul.f32 5.9604645e-08, %v3752_v43  ;;  %v1830_v58 = vmul.f32 %v3966_v20, %v3799_v48 }
 0x15a   : > { %v4010_v40 = vpop.eup %2344  ;;  %v1854_v29 = vadd.f32 %v1853_v44, %v1828_v49  ;;  %2370 = vpow2.f32 %v746_v42  ;;  %v772_v5 = vadd.f32 %v3921_v19, %v3911_v23  ;;  %v766_v45 = vmul.f32 1.442695, %v3991_v62 }
 0x15b   : > { %5289 = vst [vmem:[#allocation49_spill] sm:$0xff] %v4010_v40  ;;  %v4016_v22 = vpop.eup %2346  ;;  %2372 = vpow2.f32 %v750_v16  ;;  %v770_v27 = vmul.f32 1.442695, %v3995_v50  ;;  %v4021_v43 = vmul.f32 5.9604645e-08, %v3754_v39  ;;  %v1832_v48 = vmul.f32 %v3971_v14, %v3805_v63 }
 0x15c   : > { %v4023_v28 = vpop.eup %2348  ;;  %v1855_v49 = vadd.f32 %v1854_v29, %v1830_v58  ;;  %2374 = vpow2.f32 %v754_v60  ;;  %v773_v42 = vadd.f32 %v3930_v56, %v772_v5  ;;  %v4031_v16 = vmul.f32 5.9604645e-08, %v3756_v4 }
 0x15d   : > { %v4028_v44 = vpop.eup %2350  ;;  %2376 = vpow2.f32 %v758_v9  ;;  %v4034_v19 = vmul.f32 5.9604645e-08, %v3758_v30  ;;  %v4037_v39 = vmul.f32 5.9604645e-08, %v3760_v47  ;;  %v1834_v63 = vmul.f32 %v3982_v10, %v3811_v33 }
 0x15e   : > { %v4039_v23 = vpop.eup %2352  ;;  %v1856_v58 = vadd.f32 %v1855_v49, %v1832_v48  ;;  %2378 = vpow2.f32 %v762_v53  ;;  %v774_v60 = vadd.f32 %v3939_v2, %v773_v42  ;;  %v1836_v4 = vmul.f32 %v3987_v38, %v3815_v61 }
 0x15f   : > { %v4044_v29 = vpop.eup %2354  ;;  %2380 = vpow2.f32 %v766_v45  ;;  %v1819_v30 = vmul.f32 %v4039_v23, %v3868_v0  ;;  %v4051_v47 = vmul.f32 5.9604645e-08, %v3762_v37  ;;  %v1838_v61 = vmul.f32 %v3998_v12, %v3821_v32 }
 0x160   : > { %v4053_v9 = vpop.eup %2356  ;;  %v1857_v5 = vadd.f32 %v1856_v58, %v1834_v63  ;;  %2382 = vpow2.f32 %v770_v27  ;;  %v1821_v33 = vmul.f32 %v4044_v29, %v3878_v8  ;;  %v775_v53 = vadd.f32 %v3950_v6, %v774_v60 }
 0x161   : > { %v4058_v48 = vpop.eup %2358  ;;  %v4063_v45 = vmul.f32 5.9604645e-08, %v3764_v59  ;;  %2384 = vlog2.f32 %v3784_v13  ;;  %v793_v37 = vadd.f32 %v4044_v29, %v4039_v23  ;;  %v1823_v8 = vmul.f32 %v4053_v9, %v3888_v18 }
 0x162   : > { %v4068_v0 = vpop.eup %2360  ;;  %v1858_v27 = vadd.f32 %v1857_v5, %v1836_v4  ;;  %v1871_v49 = vadd.f32 %v1821_v33, %v1819_v30  ;;  %2386 = vlog2.f32 %v3789_v36  ;;  %v4076_v32 = vmul.f32 5.9604645e-08, %v3766_v11 }
 0x163   : > { %5290 = vst [vmem:[#allocation27_spill] sm:$0xff] %v4068_v0  ;;  %v4073_v42 = vpop.eup %2362  ;;  %v4079_v59 = vmul.f32 5.9604645e-08, %v3768_v57  ;;  %2388 = vlog2.f32 %v3794_v54  ;;  %v776_v13 = vadd.f32 %v3955_v25, %v775_v53  ;;  %v1825_v18 = vmul.f32 %v4058_v48, %v3896_v41  ;;  %v5306_v25 = vld [vmem:[#allocation43_spill] sm:$0xff] }
 0x164   : > { %v4083_v63 = vpop.eup %2364  ;;  %v1859_v58 = vadd.f32 %v1858_v27, %v1838_v61  ;;  %v1872_v60 = vadd.f32 %v1871_v49, %v1823_v8  ;;  %2390 = vlog2.f32 %v3796_v31  ;;  %v1840_v11 = vmul.f32 %v4003_v51, %v3828_v17  ;;  %v5292_v27 = vld [vmem:[#allocation31_spill] sm:$0xff]  ;;  %v5293_v8 = vld [vmem:[#allocation33_spill] sm:$0xff] }
 0x165   : > { %v4088_v36 = vpop.eup %2366  ;;  %2392 = vlog2.f32 %v3808_v34  ;;  %v777_v57 = vadd.f32 %v3966_v20, %v776_v13  ;;  %v794_v54 = vadd.f32 %v4053_v9, %v793_v37  ;;  %v1827_v30 = vmul.f32 %v4068_v0, %v3905_v21 }
 0x166   : > { %v4095_v4 = vpop.eup %2368  ;;  %v1873_v41 = vadd.f32 %v1872_v60, %v1825_v18  ;;  %v4100_v5 = vmul.f32 5.9604645e-08, %v3770_v46  ;;  %2394 = vlog2.f32 %v3818_v52  ;;  %v1860_v17 = vadd.f32 %v1859_v58, %v1840_v11  ;;  %v5291_v52 = vld [vmem:[#allocation30_spill] sm:$0xff]  ;;  %v5295_v18 = vld [vmem:[#allocation39_spill] sm:$0xff] }
 0x167   : > { %v4103_v31 = vpop.eup %2370  ;;  %v4106_v34 = vmul.f32 0.6931472, %v3854_v7  ;;  %2396 = vlog2.f32 %v3825_v3  ;;  %v778_v33 = vadd.f32 %v3971_v14, %v777_v57  ;;  %v1829_v21 = vmul.f32 %v4073_v42, %v3915_v1  ;;  %v5294_v1 = vld [vmem:[#allocation59_spill] sm:$0xff]  ;;  %v5304_v14 = vld [vmem:[#allocation52_spill] sm:$0xff] }
 0x168   : > { %v4110_v53 = vpop.eup %2372  ;;  %v1874_v61 = vadd.f32 %v1873_v41, %v1827_v30  ;;  %v4115_v46 = vmul.f32 0.6931472, %v3863_v24  ;;  %2398 = vlog2.f32 %v5291_v52  ;;  %v1842_v7 = vmul.f32 %v4010_v40, %v5292_v27  ;;  %v5296_v11 = vld [vmem:[#allocation35_spill] sm:$0xff]  ;;  %v5297_v41 = vld [vmem:[#allocation41_spill] sm:$0xff] }
 0x169   : > { %v4118_v37 = vpop.eup %2374  ;;  %2400 = vlog2.f32 %v5293_v8  ;;  %v779_v3 = vadd.f32 %v3982_v10, %v778_v33  ;;  %v795_v49 = vadd.f32 %v4058_v48, %v794_v54  ;;  %v1831_v58 = vmul.f32 %v4083_v63, %v5294_v1  ;;  %v5298_v33 = vld [vmem:[#allocation37_spill] sm:$0xff]  ;;  %v5299_v8 = vld [vmem:[#allocation50_spill] sm:$0xff] }
 0x16a   : > { %v4125_v13 = vpop.eup %2376  ;;  %v1875_v24 = vadd.f32 %v1874_v61, %v1829_v21  ;;  %v4130_v60 = vmul.f32 0.6931472, %v5295_v18  ;;  %2402 = vlog2.f32 %v5296_v11  ;;  %v1861_v30 = vadd.f32 %v1860_v17, %v1842_v7  ;;  %v5300_v1 = vld [vmem:[#allocation45_spill] sm:$0xff]  ;;  %v5301_v11 = vld [vmem:[#allocation38_spill] sm:$0xff]  ;;  %v5302_v17 = vld [vmem:[#allocation32_spill] sm:$0xff] }
 0x16b   : > { %v4133_v57 = vpop.eup %2378  ;;  %v4136_v52 = vmul.f32 0.6931472, %v5297_v41  ;;  %2404 = vlog2.f32 %v5298_v33  ;;  %v780_v54 = vadd.f32 %v3987_v38, %v779_v3  ;;  %v1833_v21 = vmul.f32 %v4088_v36, %v5299_v8  ;;  %v5303_v41 = vld [vmem:[#allocation40_spill] sm:$0xff]  ;;  %v5305_v8 = vld [vmem:[#allocation42_spill] sm:$0xff] }
 0x16c   : > { %v4140_v27 = vpop.eup %2380  ;;  %v1876_v61 = vadd.f32 %v1875_v24, %v1831_v58  ;;  %v4145_v18 = vmul.f32 0.6931472, %v5300_v1  ;;  %2406 = vlog2.f32 %v5301_v11  ;;  %v1844_v7 = vmul.f32 %v4016_v22, %v5302_v17  ;;  %v5310_v17 = vld [vmem:[#allocation46_spill] sm:$0xff] }
 0x16d   : > { %v4148_v10 = vpop.eup %2382  ;;  %2408 = vlog2.f32 %v5303_v41  ;;  %v781_v3 = vadd.f32 %v3998_v12, %v780_v54  ;;  %v796_v33 = vadd.f32 %v4068_v0, %v795_v49  ;;  %v1835_v58 = vmul.f32 %v4095_v4, %v5304_v14  ;;  %v5307_v0 = vld [vmem:[#allocation47_spill] sm:$0xff] }
 0x16e   : > { %v2385_v38 = vpop.eup %2384  ;;  %v1877_v24 = vadd.f32 %v1876_v61, %v1833_v21  ;;  %2410 = vlog2.f32 %v5305_v8  ;;  %v1862_v20 = vadd.f32 %v1861_v30, %v1844_v7  ;;  %v1837_v49 = vmul.f32 %v4103_v31, %v3947_v15  ;;  %v5308_v61 = vld [vmem:[#allocation34_spill] sm:$0xff]  ;;  %v5309_v30 = vld [vmem:[#allocation55_spill] sm:$0xff] }
 0x16f   : > { %v2387_v11 = vpop.eup %2386  ;;  %2412 = vlog2.f32 %v5306_v25  ;;  %v782_v41 = vadd.f32 %v4003_v51, %v781_v3  ;;  %v1846_v8 = vmul.f32 %v4023_v28, %v5308_v61  ;;  %v797_v7 = vadd.f32 %v4073_v42, %v796_v33 }
 0x170   : > { %v2389_v54 = vpop.eup %2388  ;;  %v1878_v12 = vadd.f32 %v1877_v24, %v1835_v58  ;;  %2414 = vlog2.f32 %v5307_v0  ;;  %v1839_v1 = vmul.f32 %v4110_v53, %v5310_v17  ;;  %v5311_v24 = vld [vmem:[#allocation36_spill] sm:$0xff]  ;;  %v1841_v33 = vmul.f32 %v4118_v37, %v3963_v26 }
 0x171   : > { %v2391_v21 = vpop.eup %2390  ;;  %2416 = vlog2.f32 %v5309_v30  ;;  %v1848_v14 = vmul.f32 %v4028_v44, %v5311_v24  ;;  %v1863_v61 = vadd.f32 %v1862_v20, %v1846_v8  ;;  %v783_v30 = vadd.f32 %v4010_v40, %v782_v41 }
 0x172   : > { %v2393_v3 = vpop.eup %2392  ;;  %v1879_v15 = vadd.f32 %v1878_v12, %v1837_v49  ;;  %2418 = vlog2.f32 %v4008_v55  ;;  %v1843_v12 = vmul.f32 %v4125_v13, %v3975_v35  ;;  %v5312_v49 = vld [vmem:[#allocation56_spill] sm:$0xff]  ;;  %v1304_v24 = vmul.f32 0.6931472, %v2385_v38 }
 0x173   : > { %v2395_v58 = vpop.eup %2394  ;;  %2420 = vlog2.f32 %v4021_v43  ;;  %v1845_v0 = vmul.f32 %v4133_v57, %v5312_v49  ;;  %v798_v20 = vadd.f32 %v4083_v63, %v797_v7  ;;  %v1306_v8 = vmul.f32 0.6931472, %v2387_v11 }
 0x174   : > { %v2397_v25 = vpop.eup %2396  ;;  %v1880_v17 = vadd.f32 %v1879_v15, %v1839_v1  ;;  %2422 = vlog2.f32 %v4031_v16  ;;  %v4188_v40 = vmul.f32 0.6931472, %v2389_v54  ;;  %v4191_v35 = vadd.f32 %v1863_v61, %v1848_v14 }
 0x175   : > { %v2399_v55 = vpop.eup %2398  ;;  %2424 = vlog2.f32 %v4034_v19  ;;  %v1847_v16 = vmul.f32 %v4140_v27, %v3991_v62  ;;  %v784_v38 = vadd.f32 %v4016_v22, %v783_v30  ;;  %v1849_v1 = vmul.f32 %v4148_v10, %v3995_v50 }
 0x176   : > { %v2401_v43 = vpop.eup %2400  ;;  %v1881_v41 = vadd.f32 %v1880_v17, %v1841_v33  ;;  %2426 = vlog2.f32 %v4037_v39  ;;  %v1310_v11 = vmul.f32 0.6931472, %v2391_v21  ;;  %v1362_v39 = vsub.f32 0.0, %v1304_v24 }
 0x177   : > { %v2403_v26 = vpop.eup %2402  ;;  %2428 = vlog2.f32 %v4051_v47  ;;  %v785_v14 = vadd.f32 %v4023_v28, %v784_v38  ;;  %v4203_v62 = vadd.f32 %v4088_v36, %v798_v20  ;;  %v1312_v15 = vmul.f32 0.6931472, %v2393_v3 }
 0x178   : > { %v2405_v19 = vpop.eup %2404  ;;  %v1882_v7 = vadd.f32 %v1881_v41, %v1843_v12  ;;  %2430 = vlog2.f32 %v4063_v45  ;;  %v1363_v61 = vsub.f32 0.0, %v1306_v8  ;;  %v1364_v50 = vsub.f32 0.0, %v4188_v40 }
 0x179   : > { %v2407_v54 = vpop.eup %2406  ;;  %2432 = vlog2.f32 %v4076_v32  ;;  %v1314_v21 = vmul.f32 0.6931472, %v2395_v58  ;;  %v1316_v33 = vmul.f32 0.6931472, %v2397_v25  ;;  %v786_v45 = vadd.f32 %v4028_v44, %v785_v14 }
 0x17a   : > { %v2409_v47 = vpop.eup %2408  ;;  %2434 = vlog2.f32 %v4079_v59  ;;  %v1883_v12 = vadd.f32 %v1882_v7, %v1845_v0  ;;  %v1318_v17 = vmul.f32 0.6931472, %v2399_v55  ;;  %v1365_v49 = vsub.f32 0.0, %v1310_v11 }
 0x17b   : > { %v2411_v30 = vpop.eup %2410  ;;  %2436 = vlog2.f32 %v4100_v5  ;;  %v5313_v24 = vsub.f32 0.0, %v4106_v34  ;;  %v4211_v20 = vmul.f32 0.6931472, %v2401_v43  ;;  %v4213_v59 = vmul.f32 0.6931472, %v2403_v26 }
 0x17c   : > { %v2413_v32 = vpop.eup %2412  ;;  %v5314_v40 = vsub.f32 0.0, %v4115_v46  ;;  %v787_v25 = vrot.slane %v786_v45, 4  ;;  %v4217_v5 = vmul.f32 0.6931472, %v2405_v19  ;;  %v4219_v41 = vmul.f32 0.6931472, %v2407_v54 }
 0x17d   : > { %2438 = vrcp.f32 %v5313_v24  ;;  %v2415_v3 = vpop.eup %2414  ;;  %v1366_v0 = vsub.f32 0.0, %v1312_v15  ;;  %v5315_v55 = vsub.f32 0.0, %v4130_v60  ;;  %v4223_v8 = vmul.f32 0.6931472, %v2409_v47 }
 0x17e   : > { %2440 = vrcp.f32 %v5314_v40  ;;  %v2417_v58 = vpop.eup %2416  ;;  %v1367_v43 = vsub.f32 0.0, %v1314_v21  ;;  %v5316_v26 = vsub.f32 0.0, %v4136_v52  ;;  %v788_v38 = vadd.f32 %v787_v25, %v786_v45 }
 0x17f   : > { %2442 = vrcp.f32 %v5315_v55  ;;  %v2419_v34 = vpop.eup %2418  ;;  %v1884_v7 = vadd.f32 %v1883_v12, %v1847_v16  ;;  %v4227_v11 = vmul.f32 0.6931472, %v2411_v30  ;;  %v1368_v19 = vsub.f32 0.0, %v1316_v33 }
 0x180   : > { %2444 = vrcp.f32 %v5316_v26  ;;  %v2421_v46 = vpop.eup %2420  ;;  %v5317_v54 = vsub.f32 0.0, %v4145_v18  ;;  %v1369_v15 = vsub.f32 0.0, %v1318_v17  ;;  %v1370_v60 = vsub.f32 0.0, %v4211_v20 }
 0x181   : > { %v2423_v14 = vpop.eup %2422  ;;  %v1371_v47 = vsub.f32 0.0, %v4213_v59  ;;  %v1372_v52 = vsub.f32 0.0, %v4217_v5  ;;  %v1373_v45 = vsub.f32 0.0, %v4219_v41  ;;  %v789_v16 = vrot.slane %v788_v38, 2 }
 0x182   : > { %2446 = vrcp.f32 %v5317_v54  ;;  %v2425_v21 = vpop.eup %2424  ;;  %v4235_v12 = vmul.f32 0.6931472, %v2413_v32  ;;  %v4237_v33 = vmul.f32 0.6931472, %v2415_v3  ;;  %v1374_v18 = vsub.f32 0.0, %v4223_v8 }
 0x183   : > { %2448 = vrcp.f32 %v1362_v39  ;;  %v2427_v30 = vpop.eup %2426  ;;  %v4240_v24 = vadd.f32 %v1884_v7, %v1849_v1  ;;  %v4242_v20 = vmul.f32 0.6931472, %v2417_v58  ;;  %v1375_v39 = vsub.f32 0.0, %v4227_v11 }
 0x184   : > { %2450 = vrcp.f32 %v1363_v61  ;;  %v2429_v17 = vpop.eup %2428  ;;  %v4245_v40 = vmul.f32 0.6931472, %v2419_v34  ;;  %v4247_v61 = vmul.f32 0.6931472, %v2421_v46  ;;  %v4249_v32 = vmul.f32 0.6931472, %v2423_v14 }
 0x185   : > { %2452 = vrcp.f32 %v1364_v50  ;;  %v2431_v59 = vpop.eup %2430  ;;  %v4251_v25 = vmul.f32 0.6931472, %v2425_v21  ;;  %v4253_v50 = vadd.f32 %v789_v16, %v788_v38  ;;  %v800_v1 = vadd.f32 %v4095_v4, %v4203_v62 }
 0x186   : > { %2454 = vrcp.f32 %v1365_v49  ;;  %v2433_v3 = vpop.eup %2432  ;;  %v4257_v5 = vmul.f32 0.6931472, %v2427_v30  ;;  %v1376_v49 = vsub.f32 0.0, %v4235_v12  ;;  %v1377_v41 = vsub.f32 0.0, %v4237_v33 }
 0x187   : > { %2456 = vrcp.f32 %v1366_v0  ;;  %v2435_v58 = vpop.eup %2434  ;;  %v4261_v34 = vmul.f32 0.6931472, %v2429_v17  ;;  %v1378_v0 = vsub.f32 0.0, %v4242_v20  ;;  %v801_v8 = vadd.f32 %v4103_v31, %v800_v1 }
 0x188   : > { %2458 = vrcp.f32 %v1367_v43  ;;  %v2437_v55 = vpop.eup %2436  ;;  %v1379_v26 = vsub.f32 0.0, %v4245_v40  ;;  %v1380_v62 = vsub.f32 0.0, %v4247_v61  ;;  %v1381_v38 = vsub.f32 0.0, %v4249_v32  ;;  %v5319_v40 = vld [vmem:[#allocation57_spill] sm:$0xff] }
 0x189   : > { %2460 = vrcp.f32 %v1368_v19  ;;  %v1382_v7 = vsub.f32 0.0, %v4251_v25  ;;  %v791_v11 = vrot.slane %v4253_v50, 1  ;;  %v802_v19 = vadd.f32 %v4110_v53, %v801_v8 }
 0x18a   : > { %2462 = vrcp.f32 %v1369_v15  ;;  %v2439_v43 = vpop.eup %2438  ;;  %v4271_v14 = vmul.f32 0.6931472, %v2431_v59  ;;  %v4273_v15 = vmul.f32 0.6931472, %v2433_v3  ;;  %v1383_v21 = vsub.f32 0.0, %v4257_v5 }
 0x18b   : > { %2464 = vrcp.f32 %v1370_v60  ;;  %v2441_v46 = vpop.eup %2440  ;;  %v1384_v30 = vsub.f32 0.0, %v4261_v34  ;;  %v5318_v60 = vld [vmem:[#allocation51_spill] sm:$0xff]  ;;  %v4281_v17 = vmul.f32 0.6931472, %v2435_v58  ;;  %v1356_v34 = vmul.f32 0.6931472, %v2437_v55 }
 0x18c   : > { %2466 = vrcp.f32 %v1371_v47  ;;  %v2443_v54 = vpop.eup %2442  ;;  %v4278_v12 = vmul.f32 %v2439_v43, %v5318_v60  ;;  %v803_v47 = vadd.f32 %v4118_v37, %v802_v19  ;;  %v4284_v20 = vmul.f32 %v2441_v46, %v4039_v23  ;;  %v5320_v46 = vld [vmem:[#allocation27_spill] sm:$0xff] }
 0x18d   : > { %2468 = vrcp.f32 %v1372_v52  ;;  %v2445_v16 = vpop.eup %2444  ;;  %v4287_v61 = vmul.f32 %v2443_v54, %v5319_v40  ;;  %v1385_v25 = vsub.f32 0.0, %v4271_v14  ;;  %v1386_v55 = vsub.f32 0.0, %v4273_v15  ;;  %v5321_v54 = vld [vmem:[#allocation44_spill] sm:$0xff] }
 0x18e   : > { %2470 = vrcp.f32 %v1373_v45  ;;  %v804_v32 = vadd.f32 %v4125_v13, %v803_v47  ;;  %v2645_v45 = vmov 0.0   ;;  %v4296_v23 = vmul.f32 %v2445_v16, %v4044_v29 }
 0x18f   : > { %v2447_v33 = vpop.eup %2446  ;;  %2472 = vrcp.f32 %v1374_v18  ;;  %1781 = vmatprep.mubr.f32.mxu1 %v2645_v45  ;;  %v1387_v60 = vsub.f32 0.0, %v4281_v17 }
 0x190   : > { %v2449_v59 = vpop.eup %2448  ;;  %v4290_v52 = vmul.f32 %v2447_v33, %v3930_v56  ;;  %2474 = vrcp.f32 %v1375_v39  ;;  %v805_v58 = vadd.f32 %v4133_v57, %v804_v32  ;;  %v5322_v33 = vld [vmem:[#allocation48_spill] sm:$0xff] }
 0x191   : > { %v2451_v3 = vpop.eup %2450  ;;  %v4299_v18 = vmul.f32 %v2449_v59, %v4053_v9  ;;  %2476 = vrcp.f32 %v1376_v49 }
 0x192   : > { %v2453_v1 = vpop.eup %2452  ;;  %v4302_v56 = vmul.f32 %v2451_v3, %v3939_v2  ;;  %2478 = vrcp.f32 %v1377_v41  ;;  %v1469_v39 = vmax.f32 %v4278_v12, %v4290_v52  ;;  %v806_v41 = vadd.f32 %v4140_v27, %v805_v58 }
 0x193   : > { %v2455_v5 = vpop.eup %2454  ;;  %v4308_v8 = vmul.f32 %v2453_v1, %v4058_v48  ;;  %2480 = vrcp.f32 %v1378_v0  ;;  %v1490_v29 = vmax.f32 %v4284_v20, %v4299_v18  ;;  %v1388_v3 = vsub.f32 0.0, %v1356_v34 }
 0x194   : > { %v2457_v9 = vpop.eup %2456  ;;  %v4313_v49 = vmul.f32 %v2455_v5, %v3950_v6  ;;  %2482 = vrcp.f32 %v1379_v26  ;;  %v1470_v2 = vmax.f32 %v4287_v61, %v4302_v56  ;;  %v807_v14 = vadd.f32 %v4148_v10, %v806_v41 }
 0x195   : > { %v2459_v43 = vpop.eup %2458  ;;  %v4320_v48 = vmul.f32 %v2457_v9, %v5320_v46  ;;  %2484 = vrcp.f32 %v1380_v62  ;;  %v1491_v0 = vmax.f32 %v4296_v23, %v4308_v8  ;;  %v5324_v9 = vld [vmem:[#allocation58_spill] sm:$0xff] }
 0x196   : > { %v2461_v19 = vpop.eup %2460  ;;  %v4325_v6 = vmul.f32 %v2459_v43, %v5321_v54  ;;  %2486 = vrcp.f32 %v1381_v38  ;;  %v1471_v26 = vmax.f32 %v1469_v39, %v4313_v49  ;;  %v808_v40 = vrot.slane %v807_v14, 4 }
 0x197   : > { %v2463_v16 = vpop.eup %2462  ;;  %v4331_v15 = vmul.f32 %v2461_v19, %v4073_v42  ;;  %2488 = vrcp.f32 %v1382_v7  ;;  %v1492_v62 = vmax.f32 %v1490_v29, %v4320_v48  ;;  %v5323_v7 = vld [vmem:[#allocation54_spill] sm:$0xff]  ;;  %v5325_v19 = vld [vmem:[#allocation60_spill] sm:$0xff] }
 0x198   : > { %v2465_v47 = vpop.eup %2464  ;;  %v4335_v59 = vmul.f32 %v2463_v16, %v5322_v33  ;;  %2490 = vrcp.f32 %v1383_v21  ;;  %v1472_v38 = vmax.f32 %v1470_v2, %v4325_v6  ;;  %v809_v5 = vadd.f32 %v808_v40, %v807_v14 }
 0x199   : > { %v2467_v32 = vpop.eup %2466  ;;  %v4339_v1 = vmul.f32 %v2465_v47, %v4083_v63  ;;  %2492 = vrcp.f32 %v1384_v30  ;;  %v1493_v42 = vmax.f32 %v1491_v0, %v4331_v15  ;;  %v792_v63 = vadd.f32 %v791_v11, %v4253_v50 }
 0x19a   : > { %v2469_v17 = vpop.eup %2468  ;;  %v4343_v39 = vmul.f32 %v2467_v32, %v5323_v7  ;;  %2494 = vrcp.f32 %v1385_v25  ;;  %v1473_v58 = vmax.f32 %v1471_v26, %v4335_v59  ;;  %v810_v41 = vrot.slane %v809_v5, 2 }
 0x19b   : > { %v2471_v21 = vpop.eup %2470  ;;  %v4347_v29 = vmul.f32 %v2469_v17, %v4088_v36  ;;  %2496 = vrcp.f32 %v1386_v55  ;;  %v1494_v34 = vmax.f32 %v1492_v62, %v4339_v1  ;;  %v1865_v0 = vrot.slane %v4191_v35, 4  ;;  %v5326_v62 = vld [vmem:[#allocation26_spill] sm:$0xff] }
 0x19c   : > { %v2473_v30 = vpop.eup %2472  ;;  %v4354_v2 = vmul.f32 %v2471_v21, %v5324_v9  ;;  %2498 = vrcp.f32 %v1387_v60  ;;  %v1474_v25 = vmax.f32 %v1472_v38, %v4343_v39  ;;  %v811_v54 = vadd.f32 %v810_v41, %v809_v5  ;;  %v5327_v9 = vld [vmem:[#allocation49_spill] sm:$0xff] }
 0x19d   : > { %v2475_v43 = vpop.eup %2474  ;;  %v4358_v46 = vmul.f32 %v2473_v30, %v4095_v4  ;;  %2500 = vrcp.f32 %v1388_v3  ;;  %v1495_v36 = vmax.f32 %v1493_v42, %v4347_v29  ;;  %v1886_v14 = vrot.slane %v4240_v24, 4 }
 0x19e   : > { %v2477_v55 = vpop.eup %2476  ;;  %v4363_v50 = vmul.f32 %v2475_v43, %v5325_v19  ;;  %v1475_v11 = vmax.f32 %v1473_v58, %v4354_v2  ;;  %2502 = vlog2.f32 %v792_v63  ;;  %v812_v38 = vrot.slane %v811_v54, 1 }
 0x19f   : > { %v2479_v26 = vpop.eup %2478  ;;  %v4368_v16 = vmul.f32 %v2477_v55, %v4103_v31  ;;  %v1496_v4 = vmax.f32 %v1494_v34, %v4358_v46  ;;  %v1866_v31 = vadd.f32 %v1865_v0, %v4191_v35  ;;  %v1887_v21 = vadd.f32 %v1886_v14, %v4240_v24 }
 0x1a0   : > { %v2481_v60 = vpop.eup %2480  ;;  %v4372_v47 = vmul.f32 %v2479_v26, %v5326_v62  ;;  %v1476_v33 = vmax.f32 %v1474_v25, %v4363_v50  ;;  %v813_v58 = vadd.f32 %v812_v38, %v811_v54  ;;  %2504 = vrcp.f32 %v792_v63 }
 0x1a1   : > { %v2483_v40 = vpop.eup %2482  ;;  %v4376_v32 = vmul.f32 %v2481_v60, %v4110_v53  ;;  %v1497_v3 = vmax.f32 %v1495_v36, %v4368_v16  ;;  %v1888_v0 = vrot.slane %v1887_v21, 2 }
 0x1a2   : > { %v2485_v42 = vpop.eup %2484  ;;  %v4381_v17 = vmul.f32 %v2483_v40, %v4003_v51  ;;  %v1477_v7 = vmax.f32 %v1475_v11, %v4372_v47  ;;  %2506 = vrcp.f32 %v813_v58 }
 0x1a3   : > { %v2487_v5 = vpop.eup %2486  ;;  %v4386_v34 = vmul.f32 %v2485_v42, %v4118_v37  ;;  %v1498_v53 = vmax.f32 %v1496_v4, %v4376_v32  ;;  %2508 = vlog2.f32 %v813_v58  ;;  %v1867_v37 = vrot.slane %v1866_v31, 2 }
 0x1a4   : > { %v2489_v30 = vpop.eup %2488  ;;  %v4390_v25 = vmul.f32 %v2487_v5, %v5327_v9  ;;  %v1478_v35 = vmax.f32 %v1476_v33, %v4381_v17  ;;  %v1889_v40 = vadd.f32 %v1888_v0, %v1887_v21 }
 0x1a5   : > { %v2491_v51 = vpop.eup %2490  ;;  %v4394_v41 = vmul.f32 %v2489_v30, %v4125_v13  ;;  %v1499_v43 = vmax.f32 %v1497_v3, %v4386_v34  ;;  %v1868_v33 = vadd.f32 %v1867_v37, %v1866_v31 }
 0x1a6   : > { %v2493_v24 = vpop.eup %2492  ;;  %v4398_v36 = vmul.f32 %v2491_v51, %v4016_v22  ;;  %v1479_v63 = vmax.f32 %v1477_v7, %v4390_v25 }
 0x1a7   : > { %v2495_v55 = vpop.eup %2494  ;;  %v4402_v19 = vmul.f32 %v2493_v24, %v4133_v57  ;;  %v1500_v11 = vmax.f32 %v1498_v53, %v4394_v41  ;;  %v1869_v58 = vrot.slane %v1868_v33, 1  ;;  %v1890_v53 = vrot.slane %v1889_v40, 1 }
 0x1a8   : > { %v2497_v54 = vpop.eup %2496  ;;  %v4406_v13 = vmul.f32 %v2495_v55, %v4023_v28  ;;  %v1480_v26 = vmax.f32 %v1478_v35, %v4398_v36 }
 0x1a9   : > { %v2499_v14 = vpop.eup %2498  ;;  %v4410_v4 = vmul.f32 %v2497_v54, %v4140_v27  ;;  %v1501_v22 = vmax.f32 %v1499_v43, %v4402_v19  ;;  %v1870_v43 = vadd.f32 %v1869_v58, %v1868_v33  ;;  %v1891_v37 = vadd.f32 %v1890_v53, %v1889_v40  ;;  %v5329_v33 = vld [vmem:[#allocation11_spill] sm:$0xff]  ;;  %v5330_v58 = vld [vmem:[#allocation12_spill] sm:$0xff]  ;;  %v5331_v53 = vld [vmem:[#allocation13_spill] sm:$0xff] }
 0x1aa   : > { %v2501_v60 = vpop.eup %2500  ;;  %v4414_v62 = vmul.f32 %v2499_v14, %v4028_v44  ;;  %v1481_v57 = vmax.f32 %v1479_v63, %v4406_v13  ;;  %v4427_v40 = vcvt.s32.f32 %v5329_v33 }
 0x1ab   : > { %v4418_v38 = vmul.f32 %v2501_v60, %v4148_v10  ;;  %v1502_v28 = vmax.f32 %v1500_v11, %v4410_v4  ;;  %v2503_v3 = vpop.eup %2502 }
 0x1ac   : > { %v1482_v42 = vmax.f32 %v1480_v26, %v4414_v62  ;;  %v1895_v44 = vmul.f32 0.6931472, %v2503_v3 }
 0x1ad   : > { %v1503_v27 = vmax.f32 %v1501_v22, %v4418_v38  ;;  %v2505_v30 = vpop.eup %2504 }
 0x1ae   : > { %v1483_v7 = vmax.f32 %v1481_v57, %v1482_v42  ;;  %v1898_v63 = vsub.f32 4.8520303, %v1895_v44  ;;  %v1892_v11 = vmul.f32 %v2505_v30, %v1870_v43  ;;  %v4433_v44 = vcvt.s32.f32 %v5331_v53  ;;  %v5332_v30 = vld [vmem:[#allocation14_spill] sm:$0xff] }
 0x1af   : > { %v1504_v5 = vmax.f32 %v1502_v28, %v1503_v27  ;;  %v2507_v35 = vpop.eup %2506  ;;  %v5328_v27 = vld [vmem:[#allocation10_spill] sm:$0xff] }
 0x1b0   : > { %v1484_v9 = vrot.slane %v1483_v7, 4  ;;  %v2509_v51 = vpop.eup %2508  ;;  %v1893_v54 = vmul.f32 %v2507_v35, %v1891_v37  ;;  %v1900_v22 = vadd.f32 %v1898_v63, %v1892_v11  ;;  %v5336_v63 = vld [vmem:[#allocation18_spill] sm:$0xff] }
 0x1b1   : > { %v1505_v31 = vrot.slane %v1504_v5, 4  ;;  %v1897_v21 = vmul.f32 0.6931472, %v2509_v51 }
 0x1b2   : > { %v1485_v10 = vmax.f32 %v1483_v7, %v1484_v9  ;;  %v4424_v7 = vcvt.s32.f32 %v5328_v27  ;;  %v4436_v9 = vcvt.s32.f32 %v5332_v30 }
 0x1b3   : > { %v1506_v24 = vmax.f32 %v1504_v5, %v1505_v31  ;;  %v1899_v26 = vsub.f32 4.8520303, %v1897_v21  ;;  %v4430_v5 = vcvt.s32.f32 %v5330_v58  ;;  %v5333_v31 = vld [vmem:[#allocation15_spill] sm:$0xff]  ;;  %v5343_v58 = vld [vmem:[#allocation25_spill] sm:$0xff] }
 0x1b4   : > { %v1486_v55 = vrot.slane %v1485_v10, 2  ;;  %v4441_v51 = vcvt.s32.f32 %v5333_v31  ;;  %v4473_v53 = vcvt.s32.f32 %v5343_v58 }
 0x1b5   : > { %v1507_v0 = vrot.slane %v1506_v24, 2  ;;  %v1901_v60 = vadd.f32 %v1899_v26, %v1893_v54  ;;  %v5338_v54 = vld [vmem:[#allocation20_spill] sm:$0xff] }
 0x1b6   : > { %v1487_v14 = vmax.f32 %v1485_v10, %v1486_v55  ;;  %v5334_v10 = vld [vmem:[#allocation16_spill] sm:$0xff]  ;;  %v4452_v55 = vcvt.s32.f32 %v5336_v63  ;;  %v4458_v26 = vcvt.s32.f32 %v5338_v54 }
 0x1b7   : > { %v1508_v57 = vmax.f32 %v1506_v24, %v1507_v0  ;;  %v1902_v28 = vadd.f32 %v1901_v60, %v1900_v22  ;;  %v4444_v43 = vcvt.s32.f32 %v5334_v10  ;;  %v5335_v24 = vld [vmem:[#allocation17_spill] sm:$0xff]  ;;  %v5337_v0 = vld [vmem:[#allocation19_spill] sm:$0xff]  ;;  %v5340_v60 = vld [vmem:[#allocation22_spill] sm:$0xff] }
 0x1b8   : > { %v1488_v3 = vrot.slane %v1487_v14, 1  ;;  %v4447_v37 = vcvt.s32.f32 %v5335_v24  ;;  %v4455_v11 = vcvt.s32.f32 %v5337_v0 }
 0x1b9   : > { %1903 = vadd.xlane.f32.xlu0 %v1902_v28  ;;  %v1509_v42 = vrot.slane %v1508_v57, 1  ;;  %v4464_v28 = vcvt.s32.f32 %v5340_v60 }
 0x1ba   : > { %v4438_v35 = vmax.f32 %v1487_v14, %v1488_v3  ;;  %v5339_v14 = vld [vmem:[#allocation21_spill] sm:$0xff]  ;;  %v5341_v3 = vld [vmem:[#allocation23_spill] sm:$0xff] }
 0x1bb   : > { %v4449_v21 = vmax.f32 %v1508_v57, %v1509_v42  ;;  %v4461_v22 = vcvt.s32.f32 %v5339_v14  ;;  %v4467_v33 = vcvt.s32.f32 %v5341_v3  ;;  %v5342_v57 = vld [vmem:[#allocation24_spill] sm:$0xff] }
 0x1bc   : > { %v4470_v42 = vcvt.s32.f32 %v5342_v57  ;;  %vm1511_vm1 = vcmp.eq.f32.partialorder %v4278_v12, %v4438_v35  ;;  %vm1513_vm2 = vcmp.eq.f32.partialorder %v4287_v61, %v4438_v35  ;;  %vm1515_vm3 = vcmp.eq.f32.partialorder %v4290_v52, %v4438_v35 }
 0x1bd   : > { %vm1517_vm4 = vcmp.eq.f32.partialorder %v4302_v56, %v4438_v35  ;;  %vm1512_vm5 = vcmp.eq.f32.partialorder %v4284_v20, %v4449_v21  ;;  %vm1514_vm6 = vcmp.eq.f32.partialorder %v4296_v23, %v4449_v21  ;;  %vm1516_vm7 = vcmp.eq.f32.partialorder %v4299_v18, %v4449_v21 }
 0x1be   : > { %vm1518_vm8 = vcmp.eq.f32.partialorder %v4308_v8, %v4449_v21  ;;  %vm1519_vm9 = vcmp.eq.f32.partialorder %v4313_v49, %v4438_v35  ;;  %vm1524_vm14 = vcmp.eq.f32.partialorder %v4339_v1, %v4449_v21  ;;  %vm1525_vm15 = vcmp.eq.f32.partialorder %v4343_v39, %v4438_v35 }
 0x1bf   : > { %vm1526_vm0 = vcmp.eq.f32.partialorder %v4347_v29, %v4449_v21  ;;  %vm1527_vm10 = vcmp.eq.f32.partialorder %v4354_v2, %v4438_v35  ;;  %vm1528_vm11 = vcmp.eq.f32.partialorder %v4358_v46, %v4449_v21  ;;  %vm1529_vm12 = vcmp.eq.f32.partialorder %v4363_v50, %v4438_v35 }
 0x1c0   : > { %vm1530_vm13 = vcmp.eq.f32.partialorder %v4368_v16, %v4449_v21  ;;  %v1543_v30 = vsel %vm1511_vm1, %v4424_v7, 128.0  ;;  %v1544_v31 = vsel %vm1512_vm5, %v4424_v7, 128.0  ;;  %v1545_v10 = vsel %vm1513_vm2, %v4427_v40, 128.0 }
 0x1c1   : > { %v1546_v24 = vsel %vm1514_vm6, %v4427_v40, 128.0  ;;  %v1547_v12 = vsel %vm1515_vm3, %v4430_v5, 128.0  ;;  %v1548_v20 = vsel %vm1516_vm7, %v4430_v5, 128.0  ;;  %v1549_v61 = vsel %vm1517_vm4, %v4433_v44, 128.0 }
 0x1c2   : > { %v1550_v23 = vsel %vm1518_vm8, %v4433_v44, 128.0  ;;  %vm1531_vm1 = vcmp.eq.f32.partialorder %v4372_v47, %v4438_v35  ;;  %vm1536_vm6 = vcmp.eq.f32.partialorder %v4394_v41, %v4449_v21  ;;  %vm1537_vm7 = vcmp.eq.f32.partialorder %v4398_v36, %v4438_v35 }
 0x1c3   : > { %vm1538_vm8 = vcmp.eq.f32.partialorder %v4402_v19, %v4449_v21  ;;  %vm1540_vm3 = vcmp.eq.f32.partialorder %v4410_v4, %v4449_v21  ;;  %v1575_v52 = vmin.f32 %v1543_v30, %v1547_v12  ;;  %v1576_v18 = vmin.f32 %v1545_v10, %v1549_v61 }
 0x1c4   : > { %v1596_v56 = vmin.f32 %v1544_v31, %v1548_v20  ;;  %v1597_v8 = vmin.f32 %v1546_v24, %v1550_v23  ;;  %v1551_v63 = vsel %vm1519_vm9, %v4436_v9, 128.0  ;;  %vm5344_vm2 = vcmp.eq.f32.partialorder %v4320_v48, %v4449_v21 }
 0x1c5   : > { %v1552_v0 = vsel %vm5344_vm2, %v4436_v9, 128.0  ;;  %vm5345_vm5 = vcmp.eq.f32.partialorder %v4325_v6, %v4438_v35  ;;  %vm5346_vm4 = vcmp.eq.f32.partialorder %v4331_v15, %v4449_v21  ;;  %v1577_v60 = vmin.f32 %v1575_v52, %v1551_v63 }
 0x1c6   : > { %v1553_v54 = vsel %vm5345_vm5, %v4441_v51, 128.0  ;;  %v1554_v14 = vsel %vm5346_vm4, %v4441_v51, 128.0  ;;  %v1598_v57 = vmin.f32 %v1596_v56, %v1552_v0  ;;  %vm5347_vm9 = vcmp.eq.f32.partialorder %v4335_v59, %v4438_v35 }
 0x1c7   : > { %v1578_v3 = vmin.f32 %v1576_v18, %v1553_v54  ;;  %v1599_v49 = vmin.f32 %v1597_v8, %v1554_v14  ;;  %v1555_v48 = vsel %vm5347_vm9, %v4444_v43, 128.0  ;;  %v1556_v6 = vsel %vm1524_vm14, %v4444_v43, 128.0 }
 0x1c8   : > { %v1557_v15 = vsel %vm1525_vm15, %v4447_v37, 128.0  ;;  %v1558_v58 = vsel %vm1526_vm0, %v4447_v37, 128.0  ;;  %v1579_v30 = vmin.f32 %v1577_v60, %v1555_v48  ;;  %v1600_v10 = vmin.f32 %v1598_v57, %v1556_v6 }
 0x1c9   : > { %v1580_v31 = vmin.f32 %v1578_v3, %v1557_v15  ;;  %v1601_v59 = vmin.f32 %v1599_v49, %v1558_v58  ;;  %v1559_v1 = vsel %vm1527_vm10, %v4452_v55, 128.0  ;;  %v1560_v39 = vsel %vm1528_vm11, %v4452_v55, 128.0 }
 0x1ca   : > { %v1561_v29 = vsel %vm1529_vm12, %v4455_v11, 128.0  ;;  %v1562_v24 = vsel %vm1530_vm13, %v4455_v11, 128.0  ;;  %v1581_v12 = vmin.f32 %v1579_v30, %v1559_v1  ;;  %v1602_v61 = vmin.f32 %v1600_v10, %v1560_v39 }
 0x1cb   : > { %v1582_v20 = vmin.f32 %v1580_v31, %v1561_v29  ;;  %v1603_v2 = vmin.f32 %v1601_v59, %v1562_v24  ;;  %v1563_v46 = vsel %vm1531_vm1, %v4458_v26, 128.0  ;;  %vm5348_vm10 = vcmp.eq.f32.partialorder %v4376_v32, %v4449_v21 }
 0x1cc   : > { %v1564_v50 = vsel %vm5348_vm10, %v4458_v26, 128.0  ;;  %vm5349_vm11 = vcmp.eq.f32.partialorder %v4381_v17, %v4438_v35  ;;  %vm5350_vm12 = vcmp.eq.f32.partialorder %v4386_v34, %v4449_v21  ;;  %v1583_v52 = vmin.f32 %v1581_v12, %v1563_v46 }
 0x1cd   : > { %v1565_v16 = vsel %vm5349_vm11, %v4461_v22, 128.0  ;;  %v1566_v23 = vsel %vm5350_vm12, %v4461_v22, 128.0  ;;  %v1604_v56 = vmin.f32 %v1602_v61, %v1564_v50  ;;  %vm5351_vm13 = vcmp.eq.f32.partialorder %v4390_v25, %v4438_v35 }
 0x1ce   : > { %v1584_v18 = vmin.f32 %v1582_v20, %v1565_v16  ;;  %v1605_v47 = vmin.f32 %v1603_v2, %v1566_v23  ;;  %v1567_v32 = vsel %vm5351_vm13, %v4464_v28, 128.0  ;;  %v1568_v17 = vsel %vm1536_vm6, %v4464_v28, 128.0 }
 0x1cf   : > { %v1569_v34 = vsel %vm1537_vm7, %v4467_v33, 128.0  ;;  %v1570_v8 = vsel %vm1538_vm8, %v4467_v33, 128.0  ;;  %v1585_v63 = vmin.f32 %v1583_v52, %v1567_v32  ;;  %v1606_v54 = vmin.f32 %v1604_v56, %v1568_v17 }
 0x1d0   : > { %v1586_v0 = vmin.f32 %v1584_v18, %v1569_v34  ;;  %v1607_v25 = vmin.f32 %v1605_v47, %v1570_v8  ;;  %vm5352_vm14 = vcmp.eq.f32.partialorder %v4406_v13, %v4438_v35  ;;  %v1572_v36 = vsel %vm1540_vm3, %v4470_v42, 128.0 }
 0x1d1   : > { %v1571_v41 = vsel %vm5352_vm14, %v4470_v42, 128.0  ;;  %vm5353_vm15 = vcmp.eq.f32.partialorder %v4414_v62, %v4438_v35  ;;  %vm5354_vm0 = vcmp.eq.f32.partialorder %v4418_v38, %v4449_v21  ;;  %v1608_v57 = vmin.f32 %v1606_v54, %v1572_v36 }
 0x1d2   : > { %v1573_v19 = vsel %vm5353_vm15, %v4473_v53, 128.0  ;;  %v1574_v14 = vsel %vm5354_vm0, %v4473_v53, 128.0  ;;  %v1587_v60 = vmin.f32 %v1585_v63, %v1571_v41  ;;  %v2646_v21 = vmov 1.0  }
 0x1d3   : > { %v1588_v3 = vmin.f32 %v1586_v0, %v1573_v19  ;;  %v1609_v13 = vmin.f32 %v1607_v25, %v1574_v14  ;;  %v2647_v39 = vmov 1966171168  }
 0x1d4   : > { %v1910_v29 = vunpack.c.l.s4 %v2647_v39 }
 0x1d5   : > { %v1589_v49 = vmin.f32 %v1587_v60, %v1588_v3  ;;  %v1610_v48 = vmin.f32 %v1608_v57, %v1609_v13 }
 0x1d7   : > { %v1590_v6 = vrot.slane %v1589_v49, 4  ;;  %v1611_v15 = vrot.slane %v1610_v48, 4 }
 0x1d9   : > { %v1591_v4 = vmin.f32 %v1589_v49, %v1590_v6  ;;  %v1612_v58 = vmin.f32 %v1610_v48, %v1611_v15 }
 0x1db   : > { %v1592_v30 = vrot.slane %v1591_v4, 2  ;;  %v1613_v31 = vrot.slane %v1612_v58, 2 }
 0x1dd   : > { %v1593_v10 = vmin.f32 %v1591_v4, %v1592_v30  ;;  %v1614_v62 = vmin.f32 %v1612_v58, %v1613_v31 }
 0x1df   : > { %v1594_v35 = vrot.slane %v1593_v10, 1  ;;  %v1615_v59 = vrot.slane %v1614_v62, 1 }
 0x1e1   : > { %v4667_v1 = vmin.f32 %v1593_v10, %v1594_v35  ;;  %v4669_v38 = vmin.f32 %v1614_v62, %v1615_v59 }
 0x1e3   : > { %vm1648_vm1 = vcmp.eq.f32.partialorder %v4473_v53, %v4669_v38  ;;  %vm1647_vm2 = vcmp.eq.f32.partialorder %v4473_v53, %v4667_v1  ;;  %vm1646_vm3 = vcmp.eq.f32.partialorder %v4470_v42, %v4669_v38  ;;  %vm1645_vm5 = vcmp.eq.f32.partialorder %v4470_v42, %v4667_v1 }
 0x1e4   : > { %2181 = vmatprep.subr.msk.mxu1 %vm1648_vm1, %v2646_v21  ;;  %vm1644_vm4 = vcmp.eq.f32.partialorder %v4467_v33, %v4669_v38  ;;  %vm1643_vm6 = vcmp.eq.f32.partialorder %v4467_v33, %v4667_v1  ;;  %vm1642_vm7 = vcmp.eq.f32.partialorder %v4464_v28, %v4669_v38  ;;  %v1911_v53 = vunpack.c.0.s8 %v1910_v29 }
 0x1e5   : > { %2182 = vmatpush1.msk.msra.mxu1 %vm1647_vm2, %v2646_v21  ;;  %vm1641_vm8 = vcmp.eq.f32.partialorder %v4464_v28, %v4667_v1  ;;  %vm1640_vm9 = vcmp.eq.f32.partialorder %v4461_v22, %v4669_v38  ;;  %v2225_v42 = vtrunc.f32 %v4667_v1  ;;  %v2227_v33 = vtrunc.f32 %v4669_v38 }
 0x1e6   : > { %2183 = vmatprep.subr.msk.mxu1 %vm1646_vm3, %v2646_v21  ;;  %vm1639_vm10 = vcmp.eq.f32.partialorder %v4461_v22, %v4667_v1  ;;  %vm1638_vm11 = vcmp.eq.f32.partialorder %v4458_v26, %v4669_v38  ;;  %v1914_v12 = vsub.s32 %v1911_v53, %v5328_v27  ;;  %vm1637_vm12 = vcmp.eq.f32.partialorder %v4458_v26, %v4667_v1 }
 0x1e7   : > { %2184 = vmatpush1.msk.msra.mxu1 %vm1645_vm5, %v2646_v21  ;;  %v2226_v28 = vcvt.f32.s32 %v2225_v42  ;;  %v2228_v24 = vcvt.f32.s32 %v2227_v33  ;;  %vm1636_vm13 = vcmp.eq.f32.partialorder %v4455_v11, %v4669_v38  ;;  %vm1635_vm14 = vcmp.eq.f32.partialorder %v4455_v11, %v4667_v1 }
 0x1e8   : > { %2185 = vmatprep.subr.msk.mxu1 %vm1644_vm4, %v2646_v21  ;;  %vm1634_vm15 = vcmp.eq.f32.partialorder %v4452_v55, %v4669_v38  ;;  %vm1633_vm0 = vcmp.eq.f32.partialorder %v4452_v55, %v4667_v1  ;;  %v5355_v26 = vlaneseq  ;;  %vm1632_vm2 = vcmp.eq.f32.partialorder %v4447_v37, %v4669_v38 }
 0x1e9   : > { %2186 = vmatpush1.msk.msra.mxu1 %vm1643_vm6, %v2646_v21  ;;  %v1908_v22 = vcombine.low %v2226_v28, %v2228_v24  ;;  %vm1631_vm3 = vcmp.eq.f32.partialorder %v4447_v37, %v4667_v1  ;;  %vm1630_vm5 = vcmp.eq.f32.partialorder %v4444_v43, %v4669_v38  ;;  %vm1629_vm4 = vcmp.eq.f32.partialorder %v4444_v43, %v4667_v1 }
 0x1ea   : > { %2187 = vmatprep.subr.msk.mxu1 %vm1642_vm7, %v2646_v21  ;;  %vm1925_vm1 = vcmp.lt.s32.totalorder %v5355_v26, 256  ;;  %vm1628_vm6 = vcmp.eq.f32.partialorder %v4441_v51, %v4669_v38  ;;  %vm1627_vm7 = vcmp.eq.f32.partialorder %v4441_v51, %v4667_v1 }
 0x1eb   : > { %2188 = vmatpush1.msk.msra.mxu1 %vm1641_vm8, %v2646_v21  ;;  %v1915_v27 = vrot.slane %v1908_v22, %v1914_v12  ;;  %vm1626_vm8 = vcmp.eq.f32.partialorder %v4436_v9, %v4669_v38 }
 0x1ec   : > { %2189 = vmatprep.subr.msk.mxu1 %vm1640_vm9, %v2646_v21  ;;  %vm1625_vm9 = vcmp.eq.f32.partialorder %v4436_v9, %v4667_v1 }
 0x1ed   : > { %2190 = vmatpush1.msk.msra.mxu1 %vm1639_vm10, %v2646_v21  ;;  %v1922_v20 = vrot.slane %v1915_v27, %v1914_v12  ;;  %vm1624_vm10 = vcmp.eq.f32.partialorder %v4433_v44, %v4669_v38 }
 0x1ee   : > { %2191 = vmatprep.subr.msk.mxu1 %vm1638_vm11, %v2646_v21  ;;  %vm1623_vm11 = vcmp.eq.f32.partialorder %v4433_v44, %v4667_v1  ;;  %v1715_v44 = vld [vmem:[%s4902_s4 + $0x10] sm:$0xff] }
 0x1ef   : > { %2192 = vmatpush1.msk.msra.mxu1 %vm1637_vm12, %v2646_v21  ;;  %1927 = vst.msk [vmem:[%s4735_s11] sm:$0x3] %vm1925_vm1, %v1922_v20  ;;  %vm1622_vm12 = vcmp.eq.f32.partialorder %v4430_v5, %v4669_v38  ;;  %vm1617_vm1 = vcmp.eq.f32.partialorder %v4424_v7, %v4667_v1 }
 0x1f0   : > { %2193 = vmatprep.subr.msk.mxu1 %vm1636_vm13, %v2646_v21  ;;  %vm1621_vm13 = vcmp.eq.f32.partialorder %v4430_v5, %v4667_v1  ;;  %v1713_v5 = vld [vmem:[%s4902_s4] sm:$0xff] }
 0x1f1   : > { %2194 = vmatpush1.msk.msra.mxu1 %vm1635_vm14, %v2646_v21  ;;  %vm1620_vm14 = vcmp.eq.f32.partialorder %v4427_v40, %v4669_v38 }
 0x1f2   : > { %2195 = vmatprep.subr.msk.mxu1 %vm1634_vm15, %v2646_v21  ;;  %vm1619_vm15 = vcmp.eq.f32.partialorder %v4427_v40, %v4667_v1  ;;  %v1714_v40 = vld [vmem:[%s4902_s4 + $0x8] sm:$0xff] }
 0x1f3   : > { %2196 = vmatpush1.msk.msra.mxu1 %vm1633_vm0, %v2646_v21  ;;  %vm1618_vm0 = vcmp.eq.f32.partialorder %v4424_v7, %v4669_v38  ;;  %v1716_v7 = vld [vmem:[%s4902_s4 + $0x18] sm:$0xff] }
 0x1f4   : > { %2197 = vmatprep.subr.msk.mxu1 %vm1632_vm2, %v2646_v21 }
 0x1f5   : > { %2198 = vmatpush1.msk.msra.mxu1 %vm1631_vm3, %v2646_v21 }
 0x1f6   : > { %2199 = vmatprep.subr.msk.mxu1 %vm1630_vm5, %v2646_v21 }
 0x1f7   : > { %2200 = vmatpush1.msk.msra.mxu1 %vm1629_vm4, %v2646_v21 }
 0x1f8   : > { %2201 = vmatprep.subr.msk.mxu1 %vm1628_vm6, %v2646_v21 }
 0x1f9   : > { %2202 = vmatpush1.msk.msra.mxu1 %vm1627_vm7, %v2646_v21 }
 0x1fa   : > { %2203 = vmatprep.subr.msk.mxu1 %vm1626_vm8, %v2646_v21 }
 0x1fb   : > { %2204 = vmatpush1.msk.msra.mxu1 %vm1625_vm9, %v2646_v21 }
 0x1fc   : > { %2205 = vmatprep.subr.msk.mxu1 %vm1624_vm10, %v2646_v21 }
 0x1fd   : > { %2206 = vmatpush1.msk.msra.mxu1 %vm1623_vm11, %v2646_v21 }
 0x1fe   : > { %2207 = vmatprep.subr.msk.mxu1 %vm1622_vm12, %v2646_v21 }
 0x1ff   : > { %2208 = vmatpush1.msk.msra.mxu1 %vm1621_vm13, %v2646_v21 }
 0x200   : > { %2209 = vmatprep.subr.msk.mxu1 %vm1620_vm14, %v2646_v21 }
 0x201   : > { %2210 = vmatpush1.msk.msra.mxu1 %vm1619_vm15, %v2646_v21 }
 0x202   : > { %2211 = vmatprep.subr.msk.mxu1 %vm1618_vm0, %v2646_v21 }
 0x203   : > { %2212 = vmatpush1.msk.msra.mxu1 %vm1617_vm1, %v2646_v21 }
 0x204   : > { %1782 = vmatmul.mubr.f32.vlgmr.msra.gmra.mxu1 %v1713_v5 }
 0x205   : > { %1787 = vmatprep.mubr.f32.mxu1 %v2645_v45 }
 0x208   : > { %1788 = vmatmul.mubr.f32.gmra.mxu1 %v1714_v40 }
 0x209   : > { %1793 = vmatprep.mubr.f32.mxu1 %v2645_v45 }
 0x20c   : > { %1794 = vmatmul.mubr.f32.gmra.mxu1 %v1715_v44 }
 0x20d   : > { %1799 = vmatprep.mubr.f32.mxu1 %v2645_v45 }
 0x210   : > { %1800 = vmatmul.mubr.f32.gmra.mxu1 %v1716_v7 }
 0x242   : > { %v1904_v9 = vpop.xlane.xlu0 %1903 }
 0x243   : > { %1905 = vst [vmem:[%s311_s23] sm:$0x1] %v1904_v9  ;;  %s2514_s23 = sshll.u32 %s2648_s22, 4  ;;  %s2515_s23 = int_to_ptr.vmem [resolvable:$false] %s2514_s23 }
 0x244   : > { %s2516_s9 = scalar_lea.vmem %s2515_s23, 32  ;;  %p2517_p1 = scmp.lt.s32.totalorder %s4794_s25, %s2515_s23 }
 0x245   : > { %p2518_p2 = scmp.lt.s32.totalorder %s2516_s9, %s2510_s21 }
 0x247   : > { %p2519_p3 = por %p2518_p2, %p2517_p1 }
 0x249   : > { %p2520_p5 = pnand %p2519_p3, %p2513_p0 }
 0x24b   : > { %2523 = shalt.err (!%p2520_p5)
}
 0x24c   : > { %s2524_s0 = scalar_lea.hbm %s1968_s19, 16  ;;  %s2528_s18 = scalar_lea.hbm %s4904_s6, 32 }
 0x24d   : > { %p2525_p6 = scmp.ne.s32.totalorder %s1968_s19, %s2524_s0  ;;  %p2529_p10 = scmp.lt.s32.totalorder %s1968_s19, %s4904_s6 }
 0x24e   : > { %p2530_p11 = scmp.lt.s32.totalorder %s2528_s18, %s2524_s0 }
 0x24f   : > { %p2526_p7 = pnand %p2525_p6, %p2738_p4 }
 0x250   : > { %p2531_p12 = por %p2530_p11, %p2529_p10 }
 0x251   : > { %p2527_p9 = pneg %p2526_p7 }
 0x253   : > { %p2532_p13 = pnand %p2531_p12, %p2527_p9 }
 0x255   : > { %2535 = shalt.err (!%p2532_p13)
}
 0x256   : > { %s5356_s9 = scalar_lea.sflag [#allocation6], %s4798_s13  ;;  %s2224_s21 = sshll.u32 %s2634_s29, 5 }
 0x257   : > { %2230 = dma.vmem_to_hbm [thread:$0]  (%p2738_p4), %s4794_s25, 16, %s1968_s19, %s5356_s9  }
 0x258   : > { %s1986_s22 = sshll.u32 %s4735_s11, 4  ;;  %s1984_s1 = scalar_lea.hbm %s4905_s7, %s2224_s21  ;;  %s1987_s22 = int_to_ptr.vmem [resolvable:$true] %s1986_s22 }
 0x259   : > { %s2536_s20 = scalar_lea.vmem %s1987_s22, 32  ;;  %s2649_s0 = smov [#allocation7]  }
 0x25a   : > { %p2537_p0 = scmp.ne.s32.totalorder %s1987_s22, %s2536_s20  ;;  %s2540_s17 = sshll.u32 %s2649_s0, 4  ;;  %s2541_s17 = int_to_ptr.vmem [resolvable:$false] %s2540_s17 }
 0x25b   : > { %s2542_s18 = scalar_lea.vmem %s2541_s17, 64  ;;  %p2543_p3 = scmp.lt.s32.totalorder %s1987_s22, %s2541_s17 }
 0x25c   : > { %p2538_p1 = pnand %p2537_p0, %p2738_p4  ;;  %p2544_p5 = scmp.lt.s32.totalorder %s2542_s18, %s2536_s20 }
 0x25e   : > { %p2539_p2 = pneg %p2538_p1  ;;  %p2545_p6 = por %p2544_p5, %p2543_p3 }
 0x260   : > { %p2546_p7 = pnand %p2545_p6, %p2539_p2 }
 0x262   : > { %2549 = shalt.err (!%p2546_p7)
}
 0x263   : > { %s2550_s11 = scalar_lea.hbm %s1984_s1, 32  ;;  %s2554_s9 = scalar_lea.hbm %s4905_s7, 64 }
 0x264   : > { %p2551_p9 = scmp.ne.s32.totalorder %s1984_s1, %s2550_s11  ;;  %p2555_p12 = scmp.lt.s32.totalorder %s1984_s1, %s4905_s7 }
 0x265   : > { %p2556_p13 = scmp.lt.s32.totalorder %s2554_s9, %s2550_s11 }
 0x266   : > { %p2552_p10 = pnand %p2551_p9, %p2738_p4 }
 0x267   : > { %p2557_p0 = por %p2556_p13, %p2555_p12 }
 0x268   : > { %p2553_p11 = pneg %p2552_p10 }
 0x26a   : > { %p2558_p1 = pnand %p2557_p0, %p2553_p11 }
 0x26c   : > { %2561 = shalt.err (!%p2558_p1)
}
 0x26d   : > { %s5357_s16 = scalar_lea.sflag [#allocation6], %s4798_s13  ;;  %s2128_s20 = sshll.u32 %s4703_s24, 6 }
 0x26e   : > { %2231 = dma.vmem_to_hbm [thread:$0]  (%p2738_p4), %s1987_s22, 32, %s1984_s1, %s5357_s16  }
 0x26f   : > { %s305_s0 = scalar_lea.vmem [#allocation3], %s2128_s20  ;;  %s2223_s13 = sshll.u32 %s2634_s29, 10 }
 0x270   : > { %s1953_s17 = sshll.u32 %s305_s0, 4  ;;  %s4849_s18 = scalar_lea.hbm %s4903_s5, %s2223_s13  ;;  %s4844_s17 = int_to_ptr.vmem [resolvable:$true] %s1953_s17 }
 0x271   : > { %s1929_s11 = scalar_lea.sflag [#allocation4], %s4703_s24  ;;  %s2562_s25 = scalar_lea.vmem %s4844_s17, 1024 }
 0x272   : > { %p2563_p2 = scmp.ne.s32.totalorder %s4844_s17, %s2562_s25  ;;  %s2650_s29 = smov [#allocation3]  }
 0x273   : > { %s2566_s19 = sshll.u32 %s2650_s29, 4  ;;  %s2567_s19 = int_to_ptr.vmem [resolvable:$false] %s2566_s19 }
 0x274   : > { %p2564_p3 = pnand %p2563_p2, %p2738_p4  ;;  %s2568_s9 = scalar_lea.vmem %s2567_s19, 2048 }
 0x275   : > { %p2569_p6 = scmp.lt.s32.totalorder %s4844_s17, %s2567_s19  ;;  %p2570_p7 = scmp.lt.s32.totalorder %s2568_s9, %s2562_s25 }
 0x276   : > { %p2565_p5 = pneg %p2564_p3 }
 0x277   : > { %p2571_p9 = por %p2570_p7, %p2569_p6 }
 0x279   : > { %p2572_p10 = pnand %p2571_p9, %p2565_p5 }
 0x2c4   : > { %v1783_v45 = vpop.f32.mrf.mxu1 }
 0x2c5   : > { %1806 = vst [vmem:[%s305_s0] sm:$0xff] %v1783_v45 }
 0x2c6   : > { %v1785_v51 = vpop.f32.mrf.mxu1 }
 0x2c7   : > { %1807 = vst [vmem:[%s305_s0 + $0x8] sm:$0xff] %v1785_v51 }
 0x2c8   : > { %v1789_v43 = vpop.f32.mrf.mxu1 }
 0x2c9   : > { %1808 = vst [vmem:[%s305_s0 + $0x10] sm:$0xff] %v1789_v43 }
 0x2ca   : > { %v1791_v37 = vpop.f32.mrf.mxu1 }
 0x2cb   : > { %1809 = vst [vmem:[%s305_s0 + $0x18] sm:$0xff] %v1791_v37 }
 0x2cc   : > { %v1795_v55 = vpop.f32.mrf.mxu1 }
 0x2cd   : > { %1810 = vst [vmem:[%s305_s0 + $0x20] sm:$0xff] %v1795_v55 }
 0x2ce   : > { %v1797_v11 = vpop.f32.mrf.mxu1 }
 0x2cf   : > { %1811 = vst [vmem:[%s305_s0 + $0x28] sm:$0xff] %v1797_v11 }
 0x2d0   : > { %v1801_v61 = vpop.f32.mrf.mxu1 }
 0x2d1   : > { %1812 = vst [vmem:[%s305_s0 + $0x30] sm:$0xff] %v1801_v61 }
 0x2d2   : > { %v1803_v2 = vpop.f32.mrf.mxu1 }
 0x2d3   : > { %1813 = vst [vmem:[%s305_s0 + $0x38] sm:$0xff] %v1803_v2 }
 0x2d4   : > { %2575 = shalt.err (!%p2572_p10)
}
 0x2d5   : > { %s2576_s21 = scalar_lea.hbm %s4849_s18, 1024  ;;  %s2580_s20 = scalar_lea.hbm %s4903_s5, 2048 }
 0x2d6   : > { %p2577_p11 = scmp.ne.s32.totalorder %s4849_s18, %s2576_s21  ;;  %p2581_p0 = scmp.lt.s32.totalorder %s4849_s18, %s4903_s5 }
 0x2d7   : > { %p2582_p1 = scmp.lt.s32.totalorder %s2580_s20, %s2576_s21 }
 0x2d8   : > { %p2578_p12 = pnand %p2577_p11, %p2738_p4 }
 0x2d9   : > { %p2583_p2 = por %p2582_p1, %p2581_p0 }
 0x2da   : > { %p2579_p13 = pneg %p2578_p12 }
 0x2dc   : > { %p2584_p3 = pnand %p2583_p2, %p2579_p13 }
 0x2de   : > { %2587 = shalt.err (!%p2584_p3)
}
 0x2df   : > { %s2651_s22 = smov 256   ;;  %s2652_s1 = smov 16  }
 0x2e0   : > { %2229 = dma.vmem_to_hbm [thread:$0]  (%p2738_p4), %s4844_s17, 1024, %s4849_s18, %s1929_s11, %s2651_s22, %s2651_s22, %s2652_s1  }
 0x2e1 PF: > { %p2245_p5 = scmp.ge.s32.totalorder %s2642_s8, 2  ;;  %s1998_s25 = sand.u32 1, %s2622_s26  }
 0x2e2   : > { %s1999_s29 = scalar_lea.sflag [#allocation4], %s1998_s25 }
 0x2e3   : > { %p2236_p6 = pnand %p2245_p5, %p2747_p8 }
 0x2e5   : > { %p2237_p7 = pneg %p2236_p6 }
 0x2e7   : > { %2613 = dma.done.wait (%p2237_p7), %s1999_s29, 1024  }
 0x2e8   : > { %2615 = vsyncadd (%p2237_p7), %s1999_s29, 4294966272  ;;  %s5358_s19 = sadd.s32 4294967294, %s2642_s8  }
 0x2e9   : > { %s2007_s9 = sand.u32 1, %s5358_s19  }
 0x2ea   : > { %s2008_s21 = scalar_lea.sflag [#allocation6], %s2007_s9 }
 0x2eb   : > { %2617 = dma.done.wait (%p2237_p7), %s2008_s21, 48  }
 0x2ec   : > { %2619 = vsyncadd (%p2237_p7), %s2008_s21, 4294967248  ;;  %s25_s8 = sadd.s32 1, %s2642_s8   ;;  %s5359_s26 = smov %s2626_s27 }
 0x2ed   : > { %p22_p4 = scmp.ge.s32.totalorder %s25_s8, 4   ;;  %s5360_s27 = smov %s2630_s28 }
 0x2ee   : > { %s5361_s28 = smov %s2753_s15  ;;  %s5362_s29 = smov %s2638_s30 }
 0x2ef   : > { %s5363_s30 = smov %s5365_s10  ;;  %24 = sbr.rel (!%p22_p4) target bundleno = 9 (0x9), region = 107 }
 0x2f4   :  { %2021 = vsyncpa [#allocation4], 1 }
 0x2f5   :  { %2023 = vsyncpa [#allocation4 + $0x1], 1 }
 0x2f6   :  { %2024 = vsyncpa [#allocation6], 1 }
 0x2f7   :  { %2026 = vsyncpa [#allocation6 + $0x1], 1 }

</bundles_post_ra>
